<compile_context>
chip_gen: v7x
topology: tpu7x:2x2x1
jax: 0.10.0
libtpu: 0.0.40
codegen_flags: <defaults>
</compile_context>

<pallas_src>
import jax
import jax.numpy as jnp
import numpy as np
from jax.experimental import pallas as pl
from jax.experimental.pallas import tpu as pltpu


def _round_up(x, m):
    return ((x + m - 1) // m) * m


# ----------------------------------------------------------------------------
# Fused Pallas kernel: both conv branches + combine, single invocation.
# ----------------------------------------------------------------------------
def _mscnn_kernel(xcty_ref, xcom_ref, nf1_ref, nl1_ref, nf2_ref, nl2_ref,
                  sel_ref, adj_ref,
                  w11_ref, w12_ref, w13_ref, w15_ref,
                  w21_ref, w22_ref, w23_ref, w24_ref, w25_ref,
                  cp_ref, comm_ref, prod_ref):
    f32 = jnp.float32

    def conv_relu(x, w_ref, nf, nl):
        """conv1d(k=3, stride=1, pad=1, no bias) + ReLU, positions on lanes.

        x : (Cin, N)  activations (channels on sublanes, flat positions on lanes)
        w : (Cout, 3*Cin) fused 3-tap weights  [tap(l-1) | tap(l) | tap(l+1)]
        nf/nl : (Cin, N) f32 masks zeroing neighbours that would bleed across
                sequence boundaries / the circular roll wrap / lane padding.
        """
        n = x.shape[1]
        xm = pltpu.roll(x, shift=1, axis=1) * nf        # x[:, l-1]
        xp = pltpu.roll(x, shift=n - 1, axis=1) * nl    # x[:, l+1]  (non-neg shift)
        xcat = jnp.concatenate([xm, x, xp], axis=0)     # (3*Cin, N), 8-aligned blocks
        y = jnp.dot(w_ref[...], xcat, preferred_element_type=f32)   # one MXU push
        return jnp.maximum(y, 0.0)

    # ---- county branch: 3(pad->8) -> 16 -> 16 -> 16 -> 1 --------------------
    nf1 = nf1_ref[...]                                   # (16, Np1), loaded once
    nl1 = nl1_ref[...]
    h = conv_relu(xcty_ref[...], w11_ref, nf1[:8], nl1[:8])
    h = conv_relu(h, w12_ref, nf1, nl1)
    h = conv_relu(h, w13_ref, nf1, nl1)
    # NOTE: forward() intentionally skips conv14 (defined but unused upstream).
    cp = conv_relu(h, w15_ref, nf1, nl1)                 # (1, Np1)  lane-dense

    # ---- community branch: 2(pad->8) -> 16 -> 32 -> 32 -> 32 -> 1 -----------
    nf2 = nf2_ref[...]                                   # (32, Np2), loaded once
    nl2 = nl2_ref[...]
    g = conv_relu(xcom_ref[...], w21_ref, nf2[:8], nl2[:8])
    g = conv_relu(g, w22_ref, nf2[:16], nl2[:16])
    g = conv_relu(g, w23_ref, nf2, nl2)
    g = conv_relu(g, w24_ref, nf2, nl2)
    comm = conv_relu(g, w25_ref, nf2, nl2)               # (1, Np2)  lane-dense

    # ---- combine (fused mul3): county_pro * community_output * adj ----------
    # Broadcast county_pro over community positions with one matmul against the
    # host-precomputed 0/1 selection matrix (no in-kernel index math).
    cp_b = jnp.dot(cp, sel_ref[...], preferred_element_type=f32)    # (1, Np2)
    prod = comm * cp_b * adj_ref[...]

    cp_ref[...] = cp
    comm_ref[...] = comm
    prod_ref[...] = prod


# ----------------------------------------------------------------------------
# Wrapper (forward pass, mirrors MScnn.forward)
# ----------------------------------------------------------------------------
def mscnn_forward(params, adj_mind, memory_county_local, memory_county_global,
                  attraction_county, memory_community, attraction_community):
    f32 = jnp.float32
    B = memory_county_local.shape[0]
    county = attraction_county.shape[0]
    community = attraction_community.shape[1]
    cw = county * community
    n1 = B * county
    n2 = B * cw
    Np1 = _round_up(max(n1, 128), 128)       # lane-pad county positions
    Np2 = _round_up(max(n2, 128), 128)       # lane-pad community positions

    # ---- county-branch input: (8, Np1)  [ch0=mem_local, ch1=mem_global, ch2=attr]
    mcl = memory_county_local.astype(f32).reshape(1, n1)
    mcg = memory_county_global.astype(f32).reshape(1, n1)
    acty = jnp.tile(attraction_county.astype(f32).reshape(1, county), (1, B))
    x_cty = jnp.concatenate([mcl, mcg, acty], axis=0)                 # (3, n1)
    x_cty = jnp.pad(x_cty, ((0, 8 - 3), (0, Np1 - n1)))

    # ---- community-branch input: (8, Np2)  [ch0=memory, ch1=attraction]
    mcom = memory_community.astype(f32).reshape(1, n2)
    acom = jnp.tile(attraction_community.astype(f32).reshape(1, cw), (1, B))
    x_com = jnp.concatenate([mcom, acom], axis=0)                     # (2, n2)
    x_com = jnp.pad(x_com, ((0, 8 - 2), (0, Np2 - n2)))

    # ---- adjacency row, tiled over batch, flattened (b,c,m): (1, Np2)
    adj_row = jnp.tile(adj_mind.astype(f32).reshape(1, cw), (1, B))
    adj_row = jnp.pad(adj_row, ((0, 0), (0, Np2 - n2)))

    # ---- host-precomputed constants (numpy -> baked as HLO constants) -------
    def _masks(n_valid, seg, npad, cmax):
        pos = np.arange(npad)
        valid = pos < n_valid
        l = pos % seg
        nf = ((l != 0) & valid).astype(np.float32)
        nl = ((l != seg - 1) & valid).astype(np.float32)
        nf = np.ascontiguousarray(np.broadcast_to(nf[None, :], (cmax, npad)))
        nl = np.ascontiguousarray(np.broadcast_to(nl[None, :], (cmax, npad)))
        return jnp.asarray(nf), jnp.asarray(nl)

    nf1, nl1 = _masks(n1, county, Np1, 16)        # widest Cin in county branch
    nf2, nl2 = _masks(n2, community, Np2, 32)     # widest Cin in community branch

    rows = np.arange(Np1)[:, None]
    cols = np.arange(Np2)[None, :]
    sel = ((cols // community == rows) & (cols < n2)).astype(np.float32)
    sel = jnp.asarray(sel)                                            # (Np1, Np2)

    # ---- fuse the 3 conv taps into one (Cout, 3*Cin[_pad]) weight per layer --
    def fuse_w(w, cin_pad=None):
        w = w.astype(f32)
        wt = jnp.transpose(w, (0, 2, 1))                  # (3, Cout, Cin)
        if cin_pad is not None and cin_pad > wt.shape[2]:
            wt = jnp.pad(wt, ((0, 0), (0, 0), (0, cin_pad - wt.shape[2])))
        return jnp.concatenate([wt[0], wt[1], wt[2]], axis=1)

    w11f = fuse_w(params["w11"], 8)    # (16, 24)
    w12f = fuse_w(params["w12"])       # (16, 48)
    w13f = fuse_w(params["w13"])       # (16, 48)
    w15f = fuse_w(params["w15"])       # (1, 48)
    w21f = fuse_w(params["w21"], 8)    # (16, 24)
    w22f = fuse_w(params["w22"])       # (32, 48)
    w23f = fuse_w(params["w23"])       # (32, 96)
    w24f = fuse_w(params["w24"])       # (32, 96)
    w25f = fuse_w(params["w25"])       # (1, 96)

    kernel_inputs = (x_cty, x_com, nf1, nl1, nf2, nl2, sel, adj_row,
                     w11f, w12f, w13f, w15f, w21f, w22f, w23f, w24f, w25f)
    # Let XLA fuse the tiny per-call input assembly straight into the pallas
    # call (x_cty, x_com, adj_row); constants / weights keep their own buffers.
    fuse_flags = [True, True, False, False, False, False, False, True] + [False] * 9

    vmem = pl.BlockSpec(memory_space=pltpu.MemorySpace.VMEM)   # whole array in VMEM
    cp_row, comm_row, prod_row = pl.pallas_call(
        _mscnn_kernel,
        out_shape=(
            jax.ShapeDtypeStruct((1, Np1), f32),     # county_pro   (lane-dense row)
            jax.ShapeDtypeStruct((1, Np2), f32),     # community_output (flat row)
            jax.ShapeDtypeStruct((1, Np2), f32),     # final_output (flat row)
        ),
        in_specs=[vmem] * len(kernel_inputs),
        out_specs=(vmem, vmem, vmem),
        compiler_params=pltpu.CompilerParams(allow_input_fusion=fuse_flags),
    )(*kernel_inputs)

    county_pro = cp_row[0, :n1].reshape(B, county)
    comm_flat = comm_row[0, :n2]
    prod_flat = prod_row[0, :n2]

    community_output = comm_flat.reshape(B, county, community)
    community_output_m_county = prod_flat.reshape(B, county, community)
    final_output = prod_flat.reshape(B, cw)
    community_out5 = comm_flat.reshape(B * county, 1, community)     # PyTorch layout
    argmax_county = jnp.argmax(county_pro, axis=1)

    return (county_pro, final_output, community_output,
            community_output_m_county, community_out5, argmax_county)


# ----------------------------------------------------------------------------
# Parameters (deterministic, PyTorch-default-like uniform init)
# ----------------------------------------------------------------------------
def init_params(key):
    def conv_w(k, cin, cout):
        bound = 1.0 / jnp.sqrt(jnp.float32(cin * 3))
        return jax.random.uniform(k, (3, cin, cout), jnp.float32, -bound, bound)

    keys = jax.random.split(key, 10)
    return {
        "w11": conv_w(keys[0], 3, 16),
        "w12": conv_w(keys[1], 16, 16),
        "w13": conv_w(keys[2], 16, 16),
        "w14": conv_w(keys[3], 16, 16),   # defined in __init__, unused in forward
        "w15": conv_w(keys[4], 16, 1),
        "w21": conv_w(keys[5], 2, 16),
        "w22": conv_w(keys[6], 16, 32),
        "w23": conv_w(keys[7], 32, 32),
        "w24": conv_w(keys[8], 32, 32),
        "w25": conv_w(keys[9], 32, 1),
    }


# ----------------------------------------------------------------------------
# Pure-numpy float64 reference (for numerical validation only)
# ----------------------------------------------------------------------------
def _ref_forward_np(params, adj, mcl, mcg, ac, mcom, acom):
    p = {k: np.asarray(v, np.float64) for k, v in params.items()}
    adj = np.asarray(adj, np.float64)
    mcl = np.asarray(mcl, np.float64)
    mcg = np.asarray(mcg, np.float64)
    ac = np.asarray(ac, np.float64)
    mcom = np.asarray(mcom, np.float64)
    acom = np.asarray(acom, np.float64)
    B = mcl.shape[0]
    county = ac.shape[0]
    community = acom.shape[1]

    def conv_relu(x, w):   # x: (N, L, Cin), w: (3, Cin, Cout); k=3, stride=1, pad=1
        L = x.shape[1]
        xp = np.pad(x, ((0, 0), (1, 1), (0, 0)))
        y = xp[:, :L] @ w[0] + xp[:, 1:L + 1] @ w[1] + xp[:, 2:L + 2] @ w[2]
        return np.maximum(y, 0.0)

    xc = np.concatenate([mcl, mcg, np.broadcast_to(ac[None], (B, county, 1))], axis=2)
    h = conv_relu(xc, p["w11"])
    h = conv_relu(h, p["w12"])
    h = conv_relu(h, p["w13"])
    h = conv_relu(h, p["w15"])
    cp = h[..., 0]                                                   # (B, county)

    xm = np.stack([mcom, np.broadcast_to(acom[None], (B, county, community))], axis=3)
    xm = xm.reshape(B * county, community, 2)
    g = conv_relu(xm, p["w21"])
    g = conv_relu(g, p["w22"])
    g = conv_relu(g, p["w23"])
    g = conv_relu(g, p["w24"])
    g = conv_relu(g, p["w25"])
    comm = g[..., 0].reshape(B, county, community)
    prod = cp[:, :, None] * comm * adj[None]
    return cp, prod.reshape(B, county * community), comm


# ----------------------------------------------------------------------------
if __name__ == "__main__":
    B, county, community = 2, 8, 16

    root = jax.random.PRNGKey(0)
    k_p, k1, k2, k3, k4, k5, k6 = jax.random.split(root, 7)

    params = init_params(k_p)

    adj_mind = (jax.random.uniform(k1, (county, community)) < 0.5).astype(jnp.float32)
    memory_county_local = jax.random.normal(k2, (B, county, 1), jnp.float32)
    memory_county_global = jax.random.normal(k3, (B, county, 1), jnp.float32)
    attraction_county = jax.random.normal(k4, (county, 1), jnp.float32)
    memory_community = jax.random.normal(k5, (B, county, community), jnp.float32)
    attraction_community = jax.random.normal(k6, (county, community), jnp.float32)

    fwd = jax.jit(mscnn_forward)
    outs = fwd(params, adj_mind, memory_county_local, memory_county_global,
               attraction_county, memory_community, attraction_community)
    outs = jax.block_until_ready(outs)

    county_pro, final_output, community_output, comm_m_county, comm_out5, amax = outs
    assert county_pro.shape == (B, county)
    assert final_output.shape == (B, county * community)
    assert community_output.shape == (B, county, community)
    assert comm_m_county.shape == (B, county, community)
    assert comm_out5.shape == (B * county, 1, community)
    assert amax.shape == (B,)

    # numerical check against a float64 numpy reference of the same forward pass
    ref_cp, ref_final, ref_comm = _ref_forward_np(
        params, adj_mind, memory_county_local, memory_county_global,
        attraction_county, memory_community, attraction_community)
    np.testing.assert_allclose(np.asarray(county_pro), ref_cp, rtol=1e-5, atol=1e-5)
    np.testing.assert_allclose(np.asarray(community_output), ref_comm, rtol=1e-5, atol=1e-5)
    np.testing.assert_allclose(np.asarray(final_output), ref_final, rtol=1e-5, atol=1e-5)

    print("KERNEL_OK")
</pallas_src>

<mosaic_0001>
module attributes {stable_mosaic.version = 11 : i64} {
  func.func @_mscnn_kernel(%arg0: memref<8x128xf32, #tpu.memory_space<vmem>>, %arg1: memref<8x256xf32, #tpu.memory_space<vmem>>, %arg2: memref<16x128xf32, #tpu.memory_space<vmem>>, %arg3: memref<16x128xf32, #tpu.memory_space<vmem>>, %arg4: memref<32x256xf32, #tpu.memory_space<vmem>>, %arg5: memref<32x256xf32, #tpu.memory_space<vmem>>, %arg6: memref<128x256xf32, #tpu.memory_space<vmem>>, %arg7: memref<1x256xf32, #tpu.memory_space<vmem>>, %arg8: memref<16x24xf32, #tpu.memory_space<vmem>>, %arg9: memref<16x48xf32, #tpu.memory_space<vmem>>, %arg10: memref<16x48xf32, #tpu.memory_space<vmem>>, %arg11: memref<1x48xf32, #tpu.memory_space<vmem>>, %arg12: memref<16x24xf32, #tpu.memory_space<vmem>>, %arg13: memref<32x48xf32, #tpu.memory_space<vmem>>, %arg14: memref<32x96xf32, #tpu.memory_space<vmem>>, %arg15: memref<32x96xf32, #tpu.memory_space<vmem>>, %arg16: memref<1x96xf32, #tpu.memory_space<vmem>>, %arg17: memref<1x128xf32, #tpu.memory_space<vmem>>, %arg18: memref<1x256xf32, #tpu.memory_space<vmem>>, %arg19: memref<1x256xf32, #tpu.memory_space<vmem>>) attributes {dimension_semantics = [], scalar_prefetch = 0 : i64, scratch_operands = 0 : i64, tpu.core_type = #tpu.core_type<tc>} {
    %c0 = arith.constant 0 : index
    %c0_0 = arith.constant 0 : index
    %0 = vector.load %arg2[%c0, %c0_0] : memref<16x128xf32, #tpu.memory_space<vmem>>, vector<16x128xf32>
    %c0_1 = arith.constant 0 : index
    %c0_2 = arith.constant 0 : index
    %1 = vector.load %arg3[%c0_1, %c0_2] : memref<16x128xf32, #tpu.memory_space<vmem>>, vector<16x128xf32>
    %c0_3 = arith.constant 0 : index
    %c0_4 = arith.constant 0 : index
    %2 = vector.load %arg0[%c0_3, %c0_4] : memref<8x128xf32, #tpu.memory_space<vmem>>, vector<8x128xf32>
    %3 = vector.extract_strided_slice %0 {offsets = [0, 0], sizes = [8, 128], strides = [1, 1]} : vector<16x128xf32> to vector<8x128xf32>
    %4 = vector.extract_strided_slice %1 {offsets = [0, 0], sizes = [8, 128], strides = [1, 1]} : vector<16x128xf32> to vector<8x128xf32>
    %c1_i32 = arith.constant 1 : i32
    %5 = tpu.dynamic_rotate %2 by %c1_i32 dim 1 : vector<8x128xf32>, i32 -> vector<8x128xf32>
    %6 = arith.mulf %5, %3 : vector<8x128xf32>
    %c127_i32 = arith.constant 127 : i32
    %7 = tpu.dynamic_rotate %2 by %c127_i32 dim 1 : vector<8x128xf32>, i32 -> vector<8x128xf32>
    %8 = arith.mulf %7, %4 : vector<8x128xf32>
    %9 = tpu.concatenate %6, %2, %8 in 0 : vector<8x128xf32>, vector<8x128xf32>, vector<8x128xf32> -> vector<24x128xf32>
    %c0_5 = arith.constant 0 : index
    %c0_6 = arith.constant 0 : index
    %10 = vector.load %arg8[%c0_5, %c0_6] : memref<16x24xf32, #tpu.memory_space<vmem>>, vector<16x24xf32>
    %cst = arith.constant dense<0.000000e+00> : vector<16x128xf32>
    %11 = tpu.matmul %10, %9, %cst {dimension_numbers = #tpu.dot_dimension_numbers<[1], [0], [0], [1], [0, 0, 1, 1], [], []>} : vector<16x24xf32>, vector<24x128xf32>, vector<16x128xf32> -> vector<16x128xf32>
    %cst_7 = arith.constant 0.000000e+00 : f32
    %12 = vector.broadcast %cst_7 : f32 to vector<16x128xf32>
    %13 = arith.maximumf %11, %12 : vector<16x128xf32>
    %c1_i32_8 = arith.constant 1 : i32
    %14 = tpu.dynamic_rotate %13 by %c1_i32_8 dim 1 : vector<16x128xf32>, i32 -> vector<16x128xf32>
    %15 = arith.mulf %14, %0 : vector<16x128xf32>
    %c127_i32_9 = arith.constant 127 : i32
    %16 = tpu.dynamic_rotate %13 by %c127_i32_9 dim 1 : vector<16x128xf32>, i32 -> vector<16x128xf32>
    %17 = arith.mulf %16, %1 : vector<16x128xf32>
    %18 = tpu.concatenate %15, %13, %17 in 0 : vector<16x128xf32>, vector<16x128xf32>, vector<16x128xf32> -> vector<48x128xf32>
    %c0_10 = arith.constant 0 : index
    %c0_11 = arith.constant 0 : index
    %19 = vector.load %arg9[%c0_10, %c0_11] : memref<16x48xf32, #tpu.memory_space<vmem>>, vector<16x48xf32>
    %cst_12 = arith.constant dense<0.000000e+00> : vector<16x128xf32>
    %20 = tpu.matmul %19, %18, %cst_12 {dimension_numbers = #tpu.dot_dimension_numbers<[1], [0], [0], [1], [0, 0, 1, 1], [], []>} : vector<16x48xf32>, vector<48x128xf32>, vector<16x128xf32> -> vector<16x128xf32>
    %cst_13 = arith.constant 0.000000e+00 : f32
    %21 = vector.broadcast %cst_13 : f32 to vector<16x128xf32>
    %22 = arith.maximumf %20, %21 : vector<16x128xf32>
    %c1_i32_14 = arith.constant 1 : i32
    %23 = tpu.dynamic_rotate %22 by %c1_i32_14 dim 1 : vector<16x128xf32>, i32 -> vector<16x128xf32>
    %24 = arith.mulf %23, %0 : vector<16x128xf32>
    %c127_i32_15 = arith.constant 127 : i32
    %25 = tpu.dynamic_rotate %22 by %c127_i32_15 dim 1 : vector<16x128xf32>, i32 -> vector<16x128xf32>
    %26 = arith.mulf %25, %1 : vector<16x128xf32>
    %27 = tpu.concatenate %24, %22, %26 in 0 : vector<16x128xf32>, vector<16x128xf32>, vector<16x128xf32> -> vector<48x128xf32>
    %c0_16 = arith.constant 0 : index
    %c0_17 = arith.constant 0 : index
    %28 = vector.load %arg10[%c0_16, %c0_17] : memref<16x48xf32, #tpu.memory_space<vmem>>, vector<16x48xf32>
    %cst_18 = arith.constant dense<0.000000e+00> : vector<16x128xf32>
    %29 = tpu.matmul %28, %27, %cst_18 {dimension_numbers = #tpu.dot_dimension_numbers<[1], [0], [0], [1], [0, 0, 1, 1], [], []>} : vector<16x48xf32>, vector<48x128xf32>, vector<16x128xf32> -> vector<16x128xf32>
    %cst_19 = arith.constant 0.000000e+00 : f32
    %30 = vector.broadcast %cst_19 : f32 to vector<16x128xf32>
    %31 = arith.maximumf %29, %30 : vector<16x128xf32>
    %c1_i32_20 = arith.constant 1 : i32
    %32 = tpu.dynamic_rotate %31 by %c1_i32_20 dim 1 : vector<16x128xf32>, i32 -> vector<16x128xf32>
    %33 = arith.mulf %32, %0 : vector<16x128xf32>
    %c127_i32_21 = arith.constant 127 : i32
    %34 = tpu.dynamic_rotate %31 by %c127_i32_21 dim 1 : vector<16x128xf32>, i32 -> vector<16x128xf32>
    %35 = arith.mulf %34, %1 : vector<16x128xf32>
    %36 = tpu.concatenate %33, %31, %35 in 0 : vector<16x128xf32>, vector<16x128xf32>, vector<16x128xf32> -> vector<48x128xf32>
    %c0_22 = arith.constant 0 : index
    %c0_23 = arith.constant 0 : index
    %37 = vector.load %arg11[%c0_22, %c0_23] : memref<1x48xf32, #tpu.memory_space<vmem>>, vector<1x48xf32>
    %cst_24 = arith.constant dense<0.000000e+00> : vector<1x128xf32>
    %38 = tpu.matmul %37, %36, %cst_24 {dimension_numbers = #tpu.dot_dimension_numbers<[1], [0], [0], [1], [0, 0, 1, 1], [], []>} : vector<1x48xf32>, vector<48x128xf32>, vector<1x128xf32> -> vector<1x128xf32>
    %cst_25 = arith.constant 0.000000e+00 : f32
    %39 = vector.broadcast %cst_25 : f32 to vector<1x128xf32>
    %40 = arith.maximumf %38, %39 : vector<1x128xf32>
    %c0_26 = arith.constant 0 : index
    %c0_27 = arith.constant 0 : index
    %41 = vector.load %arg4[%c0_26, %c0_27] : memref<32x256xf32, #tpu.memory_space<vmem>>, vector<32x256xf32>
    %c0_28 = arith.constant 0 : index
    %c0_29 = arith.constant 0 : index
    %42 = vector.load %arg5[%c0_28, %c0_29] : memref<32x256xf32, #tpu.memory_space<vmem>>, vector<32x256xf32>
    %c0_30 = arith.constant 0 : index
    %c0_31 = arith.constant 0 : index
    %43 = vector.load %arg1[%c0_30, %c0_31] : memref<8x256xf32, #tpu.memory_space<vmem>>, vector<8x256xf32>
    %44 = vector.extract_strided_slice %41 {offsets = [0, 0], sizes = [8, 256], strides = [1, 1]} : vector<32x256xf32> to vector<8x256xf32>
    %45 = vector.extract_strided_slice %42 {offsets = [0, 0], sizes = [8, 256], strides = [1, 1]} : vector<32x256xf32> to vector<8x256xf32>
    %c1_i32_32 = arith.constant 1 : i32
    %46 = tpu.dynamic_rotate %43 by %c1_i32_32 dim 1 : vector<8x256xf32>, i32 -> vector<8x256xf32>
    %47 = arith.mulf %46, %44 : vector<8x256xf32>
    %c255_i32 = arith.constant 255 : i32
    %48 = tpu.dynamic_rotate %43 by %c255_i32 dim 1 : vector<8x256xf32>, i32 -> vector<8x256xf32>
    %49 = arith.mulf %48, %45 : vector<8x256xf32>
    %50 = tpu.concatenate %47, %43, %49 in 0 : vector<8x256xf32>, vector<8x256xf32>, vector<8x256xf32> -> vector<24x256xf32>
    %c0_33 = arith.constant 0 : index
    %c0_34 = arith.constant 0 : index
    %51 = vector.load %arg12[%c0_33, %c0_34] : memref<16x24xf32, #tpu.memory_space<vmem>>, vector<16x24xf32>
    %cst_35 = arith.constant dense<0.000000e+00> : vector<16x256xf32>
    %52 = tpu.matmul %51, %50, %cst_35 {dimension_numbers = #tpu.dot_dimension_numbers<[1], [0], [0], [1], [0, 0, 1, 1], [], []>} : vector<16x24xf32>, vector<24x256xf32>, vector<16x256xf32> -> vector<16x256xf32>
    %cst_36 = arith.constant 0.000000e+00 : f32
    %53 = vector.broadcast %cst_36 : f32 to vector<16x256xf32>
    %54 = arith.maximumf %52, %53 : vector<16x256xf32>
    %55 = vector.extract_strided_slice %41 {offsets = [0, 0], sizes = [16, 256], strides = [1, 1]} : vector<32x256xf32> to vector<16x256xf32>
    %56 = vector.extract_strided_slice %42 {offsets = [0, 0], sizes = [16, 256], strides = [1, 1]} : vector<32x256xf32> to vector<16x256xf32>
    %c1_i32_37 = arith.constant 1 : i32
    %57 = tpu.dynamic_rotate %54 by %c1_i32_37 dim 1 : vector<16x256xf32>, i32 -> vector<16x256xf32>
    %58 = arith.mulf %57, %55 : vector<16x256xf32>
    %c255_i32_38 = arith.constant 255 : i32
    %59 = tpu.dynamic_rotate %54 by %c255_i32_38 dim 1 : vector<16x256xf32>, i32 -> vector<16x256xf32>
    %60 = arith.mulf %59, %56 : vector<16x256xf32>
    %61 = tpu.concatenate %58, %54, %60 in 0 : vector<16x256xf32>, vector<16x256xf32>, vector<16x256xf32> -> vector<48x256xf32>
    %c0_39 = arith.constant 0 : index
    %c0_40 = arith.constant 0 : index
    %62 = vector.load %arg13[%c0_39, %c0_40] : memref<32x48xf32, #tpu.memory_space<vmem>>, vector<32x48xf32>
    %cst_41 = arith.constant dense<0.000000e+00> : vector<32x256xf32>
    %63 = tpu.matmul %62, %61, %cst_41 {dimension_numbers = #tpu.dot_dimension_numbers<[1], [0], [0], [1], [0, 0, 1, 1], [], []>} : vector<32x48xf32>, vector<48x256xf32>, vector<32x256xf32> -> vector<32x256xf32>
    %cst_42 = arith.constant 0.000000e+00 : f32
    %64 = vector.broadcast %cst_42 : f32 to vector<32x256xf32>
    %65 = arith.maximumf %63, %64 : vector<32x256xf32>
    %c1_i32_43 = arith.constant 1 : i32
    %66 = tpu.dynamic_rotate %65 by %c1_i32_43 dim 1 : vector<32x256xf32>, i32 -> vector<32x256xf32>
    %67 = arith.mulf %66, %41 : vector<32x256xf32>
    %c255_i32_44 = arith.constant 255 : i32
    %68 = tpu.dynamic_rotate %65 by %c255_i32_44 dim 1 : vector<32x256xf32>, i32 -> vector<32x256xf32>
    %69 = arith.mulf %68, %42 : vector<32x256xf32>
    %70 = tpu.concatenate %67, %65, %69 in 0 : vector<32x256xf32>, vector<32x256xf32>, vector<32x256xf32> -> vector<96x256xf32>
    %c0_45 = arith.constant 0 : index
    %c0_46 = arith.constant 0 : index
    %71 = vector.load %arg14[%c0_45, %c0_46] : memref<32x96xf32, #tpu.memory_space<vmem>>, vector<32x96xf32>
    %cst_47 = arith.constant dense<0.000000e+00> : vector<32x256xf32>
    %72 = tpu.matmul %71, %70, %cst_47 {dimension_numbers = #tpu.dot_dimension_numbers<[1], [0], [0], [1], [0, 0, 1, 1], [], []>} : vector<32x96xf32>, vector<96x256xf32>, vector<32x256xf32> -> vector<32x256xf32>
    %cst_48 = arith.constant 0.000000e+00 : f32
    %73 = vector.broadcast %cst_48 : f32 to vector<32x256xf32>
    %74 = arith.maximumf %72, %73 : vector<32x256xf32>
    %c1_i32_49 = arith.constant 1 : i32
    %75 = tpu.dynamic_rotate %74 by %c1_i32_49 dim 1 : vector<32x256xf32>, i32 -> vector<32x256xf32>
    %76 = arith.mulf %75, %41 : vector<32x256xf32>
    %c255_i32_50 = arith.constant 255 : i32
    %77 = tpu.dynamic_rotate %74 by %c255_i32_50 dim 1 : vector<32x256xf32>, i32 -> vector<32x256xf32>
    %78 = arith.mulf %77, %42 : vector<32x256xf32>
    %79 = tpu.concatenate %76, %74, %78 in 0 : vector<32x256xf32>, vector<32x256xf32>, vector<32x256xf32> -> vector<96x256xf32>
    %c0_51 = arith.constant 0 : index
    %c0_52 = arith.constant 0 : index
    %80 = vector.load %arg15[%c0_51, %c0_52] : memref<32x96xf32, #tpu.memory_space<vmem>>, vector<32x96xf32>
    %cst_53 = arith.constant dense<0.000000e+00> : vector<32x256xf32>
    %81 = tpu.matmul %80, %79, %cst_53 {dimension_numbers = #tpu.dot_dimension_numbers<[1], [0], [0], [1], [0, 0, 1, 1], [], []>} : vector<32x96xf32>, vector<96x256xf32>, vector<32x256xf32> -> vector<32x256xf32>
    %cst_54 = arith.constant 0.000000e+00 : f32
    %82 = vector.broadcast %cst_54 : f32 to vector<32x256xf32>
    %83 = arith.maximumf %81, %82 : vector<32x256xf32>
    %c1_i32_55 = arith.constant 1 : i32
    %84 = tpu.dynamic_rotate %83 by %c1_i32_55 dim 1 : vector<32x256xf32>, i32 -> vector<32x256xf32>
    %85 = arith.mulf %84, %41 : vector<32x256xf32>
    %c255_i32_56 = arith.constant 255 : i32
    %86 = tpu.dynamic_rotate %83 by %c255_i32_56 dim 1 : vector<32x256xf32>, i32 -> vector<32x256xf32>
    %87 = arith.mulf %86, %42 : vector<32x256xf32>
    %88 = tpu.concatenate %85, %83, %87 in 0 : vector<32x256xf32>, vector<32x256xf32>, vector<32x256xf32> -> vector<96x256xf32>
    %c0_57 = arith.constant 0 : index
    %c0_58 = arith.constant 0 : index
    %89 = vector.load %arg16[%c0_57, %c0_58] : memref<1x96xf32, #tpu.memory_space<vmem>>, vector<1x96xf32>
    %cst_59 = arith.constant dense<0.000000e+00> : vector<1x256xf32>
    %90 = tpu.matmul %89, %88, %cst_59 {dimension_numbers = #tpu.dot_dimension_numbers<[1], [0], [0], [1], [0, 0, 1, 1], [], []>} : vector<1x96xf32>, vector<96x256xf32>, vector<1x256xf32> -> vector<1x256xf32>
    %cst_60 = arith.constant 0.000000e+00 : f32
    %91 = vector.broadcast %cst_60 : f32 to vector<1x256xf32>
    %92 = arith.maximumf %90, %91 : vector<1x256xf32>
    %c0_61 = arith.constant 0 : index
    %c0_62 = arith.constant 0 : index
    %93 = vector.load %arg6[%c0_61, %c0_62] : memref<128x256xf32, #tpu.memory_space<vmem>>, vector<128x256xf32>
    %cst_63 = arith.constant dense<0.000000e+00> : vector<1x256xf32>
    %94 = tpu.matmul %40, %93, %cst_63 {dimension_numbers = #tpu.dot_dimension_numbers<[1], [0], [0], [1], [0, 0, 1, 1], [], []>} : vector<1x128xf32>, vector<128x256xf32>, vector<1x256xf32> -> vector<1x256xf32>
    %95 = arith.mulf %92, %94 : vector<1x256xf32>
    %c0_64 = arith.constant 0 : index
    %c0_65 = arith.constant 0 : index
    %96 = vector.load %arg7[%c0_64, %c0_65] : memref<1x256xf32, #tpu.memory_space<vmem>>, vector<1x256xf32>
    %97 = arith.mulf %95, %96 : vector<1x256xf32>
    %c0_66 = arith.constant 0 : index
    %c0_67 = arith.constant 0 : index
    %98 = vector.load %arg17[%c0_66, %c0_67] : memref<1x128xf32, #tpu.memory_space<vmem>>, vector<1x128xf32>
    tpu.vector_store %arg17[%c0_66, %c0_67], %40 {strides = array<i32>} : memref<1x128xf32, #tpu.memory_space<vmem>>, vector<1x128xf32>,
    %c0_68 = arith.constant 0 : index
    %c0_69 = arith.constant 0 : index
    %99 = vector.load %arg18[%c0_68, %c0_69] : memref<1x256xf32, #tpu.memory_space<vmem>>, vector<1x256xf32>
    tpu.vector_store %arg18[%c0_68, %c0_69], %92 {strides = array<i32>} : memref<1x256xf32, #tpu.memory_space<vmem>>, vector<1x256xf32>,
    %c0_70 = arith.constant 0 : index
    %c0_71 = arith.constant 0 : index
    %100 = vector.load %arg19[%c0_70, %c0_71] : memref<1x256xf32, #tpu.memory_space<vmem>>, vector<1x256xf32>
    tpu.vector_store %arg19[%c0_70, %c0_71], %97 {strides = array<i32>} : memref<1x256xf32, #tpu.memory_space<vmem>>, vector<1x256xf32>,
    return
  }
}

</mosaic_0001>

<bundles_post_ra>
// kernel: squeeze.60
= control target key start
LH: loop header
LB: loop body
LE: loop exit
PB: predicated region body
PF: predicated region fallthrough
CT: control target
= control target key end

     0   :  { %s135_s0 = inlined_call_operand.vmem [shape: f32[256], index: 0, kind: input, shape index: {}]   ;;  %s136_s1 = inlined_call_operand.hbm [shape: f32[2,8,16], index: 1, kind: output, shape index: {}]  }
   0x1   :  { %v5_v0 = vld [vmem:[%s135_s0] sm:$0x3] }
   0x2   :  { %6 = vst [vmem:[#allocation2] sm:$0x3] %v5_v0 }
   0x3   :  { %2 = vsyncpa [#allocation1], 0  ;;  %s94_s0 = smov 112   ;;  %s95_s8 = smov 80   ;;  %vm8_vm0 = vcmask 130048  }
   0x4   :  { %s96_s9 = smov 96   ;;  %s97_s10 = smov 64  }
   0x5   :  { %s98_s11 = smov 48   ;;  %s99_s12 = smov 32  }
   0x6   :  { %s100_s13 = smov 16   ;;  %s101_s14 = smov [#allocation0]  }
   0x7   :  { %s56_s15 = sshll.u32 %s101_s14, 4  ;;  %s57_s15 = int_to_ptr.vmem [resolvable:$true] %s56_s15 }
   0x8   :  { %s70_s16 = scalar_lea.vmem %s57_s15, 256  ;;  %p75_p1 = scmp.lt.s32.totalorder %s57_s15, %s57_s15 }
   0x9   :  { %v10_v1 = vld [vmem:[#allocation2] sm:$0x3]   ;;  %p71_p0 = scmp.ne.s32.totalorder %s57_s15, %s70_s16  ;;  %p76_p2 = scmp.lt.s32.totalorder %s70_s16, %s70_s16 }
   0xa   :  { %v22_v2 = vld [vmem:[#allocation2] sm:$0x3]   ;;  %11 = vrot.lane.b32.xlu0 %v10_v1, %s94_s0 }
   0xb   :  { %23 = vrot.lane.b32.xlu1 %v22_v2, %s95_s8  ;;  %v16_v3 = vld [vmem:[#allocation2] sm:$0x3]   ;;  %p77_p3 = por %p76_p2, %p75_p1 }
   0xc   :  { %v28_v4 = vld [vmem:[#allocation2] sm:$0x3]  }
   0xd   :  { %v7_v5 = vld [vmem:[#allocation2] sm:$0x3]   ;;  %p78_p4 = pnand %p77_p3, %p71_p0 }
   0xe   :  { %9 = vst.msk [vmem:[#allocation0] ss:$8 sm:$0x3] %vm8_vm0, %v7_v5   ;;  %17 = vrot.lane.b32.xlu0 %v16_v3, %s96_s9  ;;  %v34_v6 = vld [vmem:[#allocation2] sm:$0x3]  }
   0xf   :  { %29 = vrot.lane.b32.xlu1 %v28_v4, %s97_s10  ;;  %v40_v7 = vld [vmem:[#allocation2] sm:$0x3]  }
  0x10   :  { %v46_v8 = vld [vmem:[#allocation2] sm:$0x3]  }
  0x12   :  { %35 = vrot.lane.b32.xlu0 %v34_v6, %s98_s11 }
  0x13   :  { %41 = vrot.lane.b32.xlu1 %v40_v7, %s99_s12 }
  0x16   :  { %47 = vrot.lane.b32.xlu0 %v46_v8, %s100_s13 }
  0x7c   :  { %v12_v9 = vpop.permute.xlu0 %11  }
  0x7d   :  { %v24_v10 = vpop.permute.xlu1 %23   ;;  %15 = vst.msk [vmem:[#allocation0 + $0x1] ss:$8 sm:$0x3] %vm8_vm0, %v12_v9  }
  0x7e   :  { %27 = vst.msk [vmem:[#allocation0 + $0x3] ss:$8 sm:$0x3] %vm8_vm0, %v24_v10  }
  0x80   :  { %v18_v11 = vpop.permute.xlu0 %17  }
  0x81   :  { %v30_v12 = vpop.permute.xlu1 %29   ;;  %21 = vst.msk [vmem:[#allocation0 + $0x2] ss:$8 sm:$0x3] %vm8_vm0, %v18_v11  }
  0x82   :  { %33 = vst.msk [vmem:[#allocation0 + $0x4] ss:$8 sm:$0x3] %vm8_vm0, %v30_v12  }
  0x84   :  { %v36_v13 = vpop.permute.xlu0 %35  }
  0x85   :  { %v42_v14 = vpop.permute.xlu1 %41   ;;  %39 = vst.msk [vmem:[#allocation0 + $0x5] ss:$8 sm:$0x3] %vm8_vm0, %v36_v13  }
  0x86   :  { %45 = vst.msk [vmem:[#allocation0 + $0x6] ss:$8 sm:$0x3] %vm8_vm0, %v42_v14  }
  0x88   :  { %v48_v15 = vpop.permute.xlu0 %47  }
  0x89   :  { %51 = vst.msk [vmem:[#allocation0 + $0x7] ss:$8 sm:$0x3] %vm8_vm0, %v48_v15  }
  0x8a   :  { %81 = shalt.err (!%p78_p4)
}
  0x8b   :  { %s82_s19 = scalar_lea.hbm %s136_s1, 256 }
  0x8c   :  { %p83_p5 = scmp.ne.s32.totalorder %s136_s1, %s82_s19  ;;  %p86_p6 = scmp.lt.u32.totalorder %s82_s19, %s136_s1 }
  0x8e   :  { %p88_p7 = pnand %p86_p6, %p83_p5 }
  0x90   :  { %91 = shalt.err (!%p88_p7)
}
  0x91   :  { %59 = dma.vmem_to_hbm [thread:$0]  %s57_s15, 256, %s136_s1, [#allocation1]  }
  0x92   :  { %92 = dma.done.wait [#allocation1], 256  }
  0x93   :  { %93 = vsyncadd [#allocation1], 4294967040 }
  0x94   :  { %61 = vsyncpa [#allocation1], 1 }

// kernel: squeeze.63
= control target key start
LH: loop header
LB: loop body
LE: loop exit
PB: predicated region body
PF: predicated region fallthrough
CT: control target
= control target key end

     0   :  { %s135_s0 = inlined_call_operand.vmem [shape: f32[256], index: 0, kind: input, shape index: {}]   ;;  %s136_s1 = inlined_call_operand.hbm [shape: f32[16,1,16], index: 1, kind: output, shape index: {}]  }
   0x1   :  { %v5_v0 = vld [vmem:[%s135_s0] sm:$0x3] }
   0x2   :  { %6 = vst [vmem:[#allocation2] sm:$0x3] %v5_v0 }
   0x3   :  { %2 = vsyncpa [#allocation1], 0  ;;  %s94_s0 = smov 112   ;;  %s95_s8 = smov 80   ;;  %vm8_vm0 = vcmask 130048  }
   0x4   :  { %s96_s9 = smov 96   ;;  %s97_s10 = smov 64  }
   0x5   :  { %s98_s11 = smov 48   ;;  %s99_s12 = smov 32  }
   0x6   :  { %s100_s13 = smov 16   ;;  %s101_s14 = smov [#allocation0]  }
   0x7   :  { %s56_s15 = sshll.u32 %s101_s14, 4  ;;  %s57_s15 = int_to_ptr.vmem [resolvable:$true] %s56_s15 }
   0x8   :  { %s70_s16 = scalar_lea.vmem %s57_s15, 256  ;;  %p75_p1 = scmp.lt.s32.totalorder %s57_s15, %s57_s15 }
   0x9   :  { %v10_v1 = vld [vmem:[#allocation2] sm:$0x3]   ;;  %p71_p0 = scmp.ne.s32.totalorder %s57_s15, %s70_s16  ;;  %p76_p2 = scmp.lt.s32.totalorder %s70_s16, %s70_s16 }
   0xa   :  { %v22_v2 = vld [vmem:[#allocation2] sm:$0x3]   ;;  %11 = vrot.lane.b32.xlu0 %v10_v1, %s94_s0 }
   0xb   :  { %23 = vrot.lane.b32.xlu1 %v22_v2, %s95_s8  ;;  %v16_v3 = vld [vmem:[#allocation2] sm:$0x3]   ;;  %p77_p3 = por %p76_p2, %p75_p1 }
   0xc   :  { %v28_v4 = vld [vmem:[#allocation2] sm:$0x3]  }
   0xd   :  { %v7_v5 = vld [vmem:[#allocation2] sm:$0x3]   ;;  %p78_p4 = pnand %p77_p3, %p71_p0 }
   0xe   :  { %9 = vst.msk [vmem:[#allocation0] ss:$8 sm:$0x3] %vm8_vm0, %v7_v5   ;;  %17 = vrot.lane.b32.xlu0 %v16_v3, %s96_s9  ;;  %v34_v6 = vld [vmem:[#allocation2] sm:$0x3]  }
   0xf   :  { %29 = vrot.lane.b32.xlu1 %v28_v4, %s97_s10  ;;  %v40_v7 = vld [vmem:[#allocation2] sm:$0x3]  }
  0x10   :  { %v46_v8 = vld [vmem:[#allocation2] sm:$0x3]  }
  0x12   :  { %35 = vrot.lane.b32.xlu0 %v34_v6, %s98_s11 }
  0x13   :  { %41 = vrot.lane.b32.xlu1 %v40_v7, %s99_s12 }
  0x16   :  { %47 = vrot.lane.b32.xlu0 %v46_v8, %s100_s13 }
  0x7c   :  { %v12_v9 = vpop.permute.xlu0 %11  }
  0x7d   :  { %v24_v10 = vpop.permute.xlu1 %23   ;;  %15 = vst.msk [vmem:[#allocation0 + $0x1] ss:$8 sm:$0x3] %vm8_vm0, %v12_v9  }
  0x7e   :  { %27 = vst.msk [vmem:[#allocation0 + $0x3] ss:$8 sm:$0x3] %vm8_vm0, %v24_v10  }
  0x80   :  { %v18_v11 = vpop.permute.xlu0 %17  }
  0x81   :  { %v30_v12 = vpop.permute.xlu1 %29   ;;  %21 = vst.msk [vmem:[#allocation0 + $0x2] ss:$8 sm:$0x3] %vm8_vm0, %v18_v11  }
  0x82   :  { %33 = vst.msk [vmem:[#allocation0 + $0x4] ss:$8 sm:$0x3] %vm8_vm0, %v30_v12  }
  0x84   :  { %v36_v13 = vpop.permute.xlu0 %35  }
  0x85   :  { %v42_v14 = vpop.permute.xlu1 %41   ;;  %39 = vst.msk [vmem:[#allocation0 + $0x5] ss:$8 sm:$0x3] %vm8_vm0, %v36_v13  }
  0x86   :  { %45 = vst.msk [vmem:[#allocation0 + $0x6] ss:$8 sm:$0x3] %vm8_vm0, %v42_v14  }
  0x88   :  { %v48_v15 = vpop.permute.xlu0 %47  }
  0x89   :  { %51 = vst.msk [vmem:[#allocation0 + $0x7] ss:$8 sm:$0x3] %vm8_vm0, %v48_v15  }
  0x8a   :  { %81 = shalt.err (!%p78_p4)
}
  0x8b   :  { %s82_s19 = scalar_lea.hbm %s136_s1, 256 }
  0x8c   :  { %p83_p5 = scmp.ne.s32.totalorder %s136_s1, %s82_s19  ;;  %p86_p6 = scmp.lt.u32.totalorder %s82_s19, %s136_s1 }
  0x8e   :  { %p88_p7 = pnand %p86_p6, %p83_p5 }
  0x90   :  { %91 = shalt.err (!%p88_p7)
}
  0x91   :  { %59 = dma.vmem_to_hbm [thread:$0]  %s57_s15, 256, %s136_s1, [#allocation1]  }
  0x92   :  { %92 = dma.done.wait [#allocation1], 256  }
  0x93   :  { %93 = vsyncadd [#allocation1], 4294967040 }
  0x94   :  { %61 = vsyncpa [#allocation1], 1 }

// kernel: squeeze.59
= control target key start
LH: loop header
LB: loop body
LE: loop exit
PB: predicated region body
PF: predicated region fallthrough
CT: control target
= control target key end

     0   :  { %vm7_vm0 = vcmask 64512   ;;  %s39_s0 = inlined_call_operand.vmem [shape: f32[16], index: 0, kind: input, shape index: {}]   ;;  %s40_s1 = inlined_call_operand.vmem [shape: f32[2,8], index: 1, kind: output, shape index: {}]  }
   0x1   :  { %v4_v0 = vld [vmem:[%s39_s0] sm:$0x1]  ;;  %s22_s0 = smov 120  }
   0x2   :  { %5 = vst [vmem:[#allocation1] sm:$0x1] %v4_v0 }
   0x9   :  { %v9_v1 = vld [vmem:[#allocation1] sm:$0x1]  }
   0xa   :  { %v6_v2 = vld [vmem:[#allocation1] sm:$0x1]   ;;  %10 = vrot.lane.b32.xlu0 %v9_v1, %s22_s0 }
   0xb   :  { %8 = vst.msk [vmem:[#allocation0] sm:$0x1] %vm7_vm0, %v6_v2  }
  0x7c   :  { %v11_v3 = vpop.permute.xlu0 %10  }
  0x7d   :  { %14 = vst.msk [vmem:[#allocation0 + $0x1] sm:$0x1] %vm7_vm0, %v11_v3  }
  0x84   :  { %v18_v4 = vld [vmem:[#allocation0] sm:$0x3] }
  0x85   :  { %20 = vst [vmem:[%s40_s1] sm:$0x3] %v18_v4 }

// kernel: mscnn_forward.2
= control target key start
LH: loop header
LB: loop body
LE: loop exit
PB: predicated region body
PF: predicated region fallthrough
CT: control target
= control target key end

     0   :  { %v169_v5 = vlaneseq  ;;  %vm179_vm5 = vcmask 1045504   ;;  %vm198_vm6 = vcmask 1046528   ;;  %vm371_vm8 = vcmask 195584   ;;  %s2970_s0 = inlined_call_operand.vmem [shape: f32[16,128], index: 0, kind: input, shape index: {}]   ;;  %s2971_s1 = inlined_call_operand.vmem [shape: f32[16,128], index: 1, kind: input, shape index: {}]   ;;  %s2972_s2 = inlined_call_operand.vmem [shape: f32[32,256], index: 2, kind: input, shape index: {}]   ;;  %s2973_s3 = inlined_call_operand.vmem [shape: f32[32,256], index: 3, kind: input, shape index: {}]   ;;  %s2974_s4 = inlined_call_operand.vmem [shape: f32[128,256], index: 4, kind: input, shape index: {}]   ;;  %s2975_s5 = inlined_call_operand.vmem [shape: f32[1,256], index: 5, kind: input, shape index: {}]   ;;  %s2976_s6 = inlined_call_operand.vmem [shape: f32[16,24], index: 6, kind: input, shape index: {}]   ;;  %s2977_s7 = inlined_call_operand.vmem [shape: f32[16,48], index: 7, kind: input, shape index: {}]   ;;  %s2978_s8 = inlined_call_operand.vmem [shape: f32[16,48], index: 8, kind: input, shape index: {}]   ;;  %s2979_s9 = inlined_call_operand.vmem [shape: f32[1,48], index: 9, kind: input, shape index: {}]   ;;  %s2980_s10 = inlined_call_operand.vmem [shape: f32[16,24], index: 10, kind: input, shape index: {}]   ;;  %s2981_s11 = inlined_call_operand.vmem [shape: f32[32,48], index: 11, kind: input, shape index: {}]   ;;  %s2982_s12 = inlined_call_operand.vmem [shape: f32[32,96], index: 12, kind: input, shape index: {}]   ;;  %s2983_s13 = inlined_call_operand.vmem [shape: f32[32,96], index: 13, kind: input, shape index: {}]   ;;  %s2984_s14 = inlined_call_operand.vmem [shape: f32[1,96], index: 14, kind: input, shape index: {}]   ;;  %s2985_s15 = inlined_call_operand.vmem [shape: f32[1,256], index: 15, kind: input, shape index: {}]   ;;  %s2986_s16 = inlined_call_operand.<no memory space> [shape: f32[], index: 16, kind: input, shape index: {}]   ;;  %s2987_s17 = inlined_call_operand.vmem [shape: f32[1,256], index: 17, kind: input, shape index: {}]   ;;  %s2988_s18 = inlined_call_operand.<no memory space> [shape: f32[], index: 18, kind: input, shape index: {}]   ;;  %s2989_s19 = inlined_call_operand.<no memory space> [shape: s32[], index: 19, kind: input, shape index: {}]   ;;  %s2990_s20 = inlined_call_operand.vmem [shape: f32[1,16], index: 20, kind: input, shape index: {}]   ;;  %s2991_s21 = inlined_call_operand.vmem [shape: f32[1,16], index: 21, kind: input, shape index: {}]   ;;  %s2992_s22 = inlined_call_operand.vmem [shape: f32[1,16], index: 22, kind: input, shape index: {}]   ;;  %s2993_s23 = inlined_call_operand.<no memory space> [shape: s32[], index: 23, kind: input, shape index: {}]   ;;  %s2994_s24 = inlined_call_operand.<no memory space> [shape: s32[], index: 24, kind: input, shape index: {}]   ;;  %s2995_s25 = inlined_call_operand.vmem [shape: f32[1,128], index: 25, kind: output, shape index: {0}]   ;;  %s2996_s26 = inlined_call_operand.vmem [shape: f32[1,256], index: 26, kind: output, shape index: {1}]   ;;  %s2997_s27 = inlined_call_operand.vmem [shape: f32[1,256], index: 27, kind: output, shape index: {2}]  }
   0x1   :  { %3008 = sst [smem:[#allocation29_spill]] %s2970_s0  ;;  %v33_v0 = vstv %s2986_s16  ;;  %v36_v1 = vstv %s2993_s23  ;;  %v37_v2 = vstv %s2988_s18  ;;  %v38_v3 = vstv %s2994_s24 }
   0x2   :  { %3009 = sst [smem:[#allocation30_spill]] %s2971_s1  ;;  %v42_v4 = vstv %s2989_s19  ;;  %v2128_v6 = vshrl.u32 %v169_v5, 7  ;;  %v2131_v7 = vand.u32 127, %v169_v5  ;;  %v201_v8 = vld [vmem:[%s2992_s22] sm:$0x1]  ;;  %s3027_s28 = sld [smem:[#allocation29_spill]] }
   0x3   :  { %3010 = sst [smem:[#allocation31_spill]] %s2972_s2  ;;  %v168_v9 = vld [vmem:[%s2990_s20] sm:$0x1]  ;;  %v1693_v33 = vld [vmem:[%s2985_s15 + $0x1] sm:$0x1]  ;;  %s3028_s29 = sld [smem:[#allocation30_spill]] }
   0x4   :  { %3011 = sst [smem:[#allocation32_spill]] %s2973_s3  ;;  %v171_v10 = vadd.s32 8, %v2128_v6  ;;  %v187_v11 = vld [vmem:[%s2991_s21] sm:$0x1]  ;;  %vm205_vm0 = vcmp.lt.s32.totalorder %v2128_v6, 1  ;;  %vm177_vm1 = vcmp.lt.s32.totalorder %v2131_v7, 16  ;;  %vm2148_vm2 = vcmp.lt.s32.totalorder %v2128_v6, %v38_v3 }
   0x5   :  { %3012 = sst [smem:[#allocation33_spill]] %s2974_s4  ;;  %v206_v12 = vsel %vm205_vm0, %v201_v8, %v33_v0  ;;  %vm227_vm3 = vcmp.lt.s32.totalorder %v2131_v7, %v36_v1  ;;  %vm2179_vm9 = vcmp.lt.s32.totalorder %v2128_v6, %v42_v4  ;;  %v1694_v34 = vld [vmem:[%s2987_s17 + $0x1] sm:$0x1]  ;;  %v273_v35 = vld [vmem:[%s2985_s15] sm:$0x1]  ;;  %s1966_s15 = smov 1  }
   0x6   :  { %3013 = sst [smem:[#allocation34_spill]] %s2975_s5  ;;  %vm172_vm4 = vcmp.lt.s32.totalorder %v171_v10, 9  ;;  %v211_v14 = vsel %vm177_vm1, %v206_v12, %v33_v0  ;;  %vm2157_vm7 = vmand %vm2148_vm2, %vm227_vm3  ;;  %v333_v38 = vsel %vm205_vm0, %v1694_v34, %v33_v0  ;;  %v282_v40 = vld [vmem:[%s2987_s17] sm:$0x1]  ;;  %s1967_s17 = smov 127   ;;  %vm761_vm10 = vcmp.lt.s32.totalorder %v2131_v7, 1 }
   0x7   :  { %3014 = sst [smem:[#allocation35_spill]] %s2976_s6  ;;  %v173_v15 = vsel %vm172_vm4, %v168_v9, %v33_v0  ;;  %v192_v16 = vsel %vm172_vm4, %v187_v11, %v33_v0  ;;  %v233_v20 = vsel %vm2148_vm2, %v211_v14, %v37_v2  ;;  %v323_v37 = vsel %vm172_vm4, %v1693_v33, %v33_v0  ;;  %s3029_s24 = sld [smem:[#allocation31_spill]] }
   0x8   :  { %3015 = sst [smem:[#allocation36_spill]] %s2977_s7  ;;  %v178_v17 = vsel %vm177_vm1, %v173_v15, %v33_v0  ;;  %v197_v18 = vsel %vm177_vm1, %v192_v16, %v33_v0  ;;  %v238_v25 = vsel %vm2157_vm7, %v233_v20, %v37_v2  ;;  %s3024_s21 = sld [smem:[#allocation35_spill]]  ;;  %v278_v39 = vsel %vm172_vm4, %v273_v35, %v33_v0  ;;  %v2218_v52 = vld [vmem:[%s3027_s28] sm:$0xff] }
   0x9   :  { %3016 = sst [smem:[#allocation37_spill]] %s2978_s8  ;;  %v180_v21 = vsel %vm179_vm5, %v178_v17, %v33_v0  ;;  %v199_v22 = vsel %vm198_vm6, %v197_v18, %v33_v0  ;;  %v325_v41 = vsel %vm198_vm6, %v323_v37, %v33_v0  ;;  %v280_v42 = vsel %vm198_vm6, %v278_v39, %v33_v0  ;;  %v2224_v55 = vld [vmem:[%s3028_s29] sm:$0xff]  ;;  %s3030_s22 = sld [smem:[#allocation36_spill]]  ;;  %v2262_v17 = vld [vmem:[%s3027_s28 + $0x8] sm:$0xff] }
   0xa   :  { %3017 = sst [smem:[#allocation38_spill]] %s2979_s9  ;;  %v181_v23 = vrot.slane %v180_v21, 6  ;;  %v200_v24 = vrot.slane %v199_v22, 7  ;;  %v287_v43 = vsel %vm205_vm0, %v282_v40, %v33_v0  ;;  %v326_v44 = vrot.slane %v325_v41, 7  ;;  %v2269_v22 = vld [vmem:[%s3028_s29 + $0x8] sm:$0xff]  ;;  %s3031_s30 = sld [smem:[#allocation32_spill]] }
   0xb   :  { %3018 = sst [smem:[#allocation39_spill]] %s2980_s10  ;;  %v345_v45 = vsel %vm2179_vm9, %v333_v38, %v37_v2  ;;  %v281_v46 = vrot.slane %v280_v42, 7  ;;  %v299_v47 = vsel %vm2179_vm9, %v287_v43, %v37_v2  ;;  %v1968_v14 = vmov 0.0   ;;  %s3033_s19 = sld [smem:[#allocation37_spill]] }
   0xc   :  { %3019 = sst [smem:[#allocation40_spill]] %s2981_s11  ;;  %v242_v26 = vsel %vm2148_vm2, %v200_v24, %v37_v2  ;;  %v255_v27 = vsel %vm2148_vm2, %v181_v23, %v37_v2  ;;  %v349_v48 = vsel %vm2179_vm9, %v326_v44, %v37_v2  ;;  %vm469_vm11 = vcmask 392192   ;;  %s3032_s10 = sld [smem:[#allocation39_spill]] }
   0xd   :  { %v247_v28 = vsel %vm2157_vm7, %v242_v26, %v37_v2  ;;  %v260_v29 = vsel %vm2157_vm7, %v255_v27, %v37_v2  ;;  %v303_v49 = vsel %vm2179_vm9, %v281_v46, %v37_v2  ;;  %v353_v50 = vmax.f32 %v345_v45, %v349_v48  ;;  %v2235_v62 = vld [vmem:[%s3029_s24] sm:$0xff]  ;;  %v2242_v0 = vld [vmem:[%s3029_s24 + $0x8] sm:$0xff]  ;;  %s3034_s0 = sld [smem:[#allocation40_spill]]  ;;  %s3035_s20 = sld [smem:[#allocation38_spill]] }
   0xe   :  { %v369_v30 = vld [vmem:[%s3024_s21] sm:$0xff]  ;;  %v251_v31 = vmax.f32 %v238_v25, %v247_v28  ;;  %v307_v51 = vmax.f32 %v299_v47, %v303_v49  ;;  %v370_v59 = vld [vmem:[%s3024_s21 + $0x8] sm:$0xff]  ;;  %vm770_vm12 = vcmp.lt.s32.totalorder %v2131_v7, 127  ;;  %vm1970_vm13 = vmmov 0   ;;  %s3036_s7 = sld [smem:[#allocation33_spill]]  ;;  %s3037_s23 = sld [smem:[#allocation34_spill]] }
   0xf   :  { %1751 = vmatprep.mubr.msk.f32.mxu0 %vm371_vm8, %v369_v30  ;;  %757 = vrot.lane.b32.xlu1 %v353_v50, %s1966_s15  ;;  %v467_v15 = vld [vmem:[%s3030_s22] sm:$0xff]  ;;  %v468_v37 = vld [vmem:[%s3030_s22 + $0x8] sm:$0xff]  ;;  %vm1077_vm14 = vcmask 785408   ;;  %v1971_v7 = vmov 1966171168   ;;  %vm1645_vm15 = vcmp.lt.s32.totalorder %v169_v5, 256 }
  0x10   :  { %v264_v36 = vmax.f32 %v251_v31, %v260_v29  ;;  %1766 = vmatprep.mubr.msk.f32.mxu1 %vm469_vm11, %v467_v15  ;;  %v2277_v28 = vld [vmem:[%s3031_s30] sm:$0xff]  ;;  %v2282_v29 = vld [vmem:[%s3031_s30 + $0x8] sm:$0xff] }
  0x12   :  { %363 = vrot.lane.b32.xlu0 %v264_v36, %s1966_s15  ;;  %v776_v38 = vld [vmem:[%s3032_s10 + $0x8] sm:$0xff] }
  0x16   :  { %366 = vrot.lane.b32.xlu0 %v264_v36, %s1967_s17 }
  0x1a   :  { %755 = vrot.lane.b32.xlu0 %v307_v51, %s1966_s15 }
  0x81   :  { %v758_v60 = vpop.permute.xlu1 %757 }
  0x84   :  { %v364_v53 = vpop.permute.xlu0 %363 }
  0x85   :  { %v365_v54 = vmul.f32 %v364_v53, %v2218_v52 }
  0x87   :  { %v1799_v56 = vpack.c.bf16 %v264_v36, %v365_v54  ;;  %v775_v36 = vld [vmem:[%s3032_s10] sm:$0xff] }
  0x88   :  { %v367_v57 = vpop.permute.xlu0 %366 }
  0x89   :  { %1800 = vmatprep.subr.bf16.mxu0 %v1799_v56  ;;  %v368_v58 = vmul.f32 %v367_v57, %v2224_v55 }
  0x8a   :  { %1802 = vmatpush3.bf16.msra.mxu0 %v1799_v56  ;;  %v565_v56 = vld [vmem:[%s3033_s19] sm:$0xff] }
  0x8b   :  { %1749 = vmatprep.subr.mxu0 %v368_v58 }
  0x8c   :  { %v756_v61 = vpop.permute.xlu0 %755 }
  0x8d   :  { %v763_v63 = vsel %vm761_vm10, %v758_v60, %v756_v61  ;;  %v762_v1 = vsel %vm761_vm10, %v756_v61, %v758_v60 }
  0x8e   :  { %1750 = vmatpush3.msra.mxu0 %v368_v58  ;;  %v764_v2 = vmul.f32 %v763_v63, %v2235_v62  ;;  %v765_v3 = vmul.f32 %v762_v1, %v2242_v0  ;;  %v2327_v63 = vld [vmem:[%s3029_s24 + $0x10] sm:$0xff]  ;;  %v2332_v1 = vld [vmem:[%s3029_s24 + $0x18] sm:$0xff] }
  0x8f   :  { %1752 = vmatmul.mubr.msk.f32.vlgmr.msra.gmra.mrb[0].mxu0 %vm371_vm8, %v370_v59 }
  0x90   :  { %v1838_v4 = vpack.c.bf16 %v307_v51, %v764_v2  ;;  %v1836_v8 = vpack.c.bf16 %v353_v50, %v765_v3  ;;  %847 = vmatprep.mubr.f32.mxu0 %v1968_v14 }
  0x92   :  { %1837 = vmatprep.subr.bf16.mxu0 %v1836_v8 }
  0x93   :  { %1839 = vmatpush1.bf16.msra.mxu0 %v1838_v4 }
 0x162   :  { %v1753_v9 = vpop.f32.mrb[0].mxu0 }
 0x163   :  { %v454_v10 = vmax.f32 %v1753_v9, 0.0  ;;  %v444_v11 = vpop.f32.mrb[1].mxu0 }
 0x164   :  { %v453_v12 = vmax.f32 %v444_v11, 0.0 }
 0x165   :  { %457 = vrot.lane.b32.xlu1 %v454_v10, %s1966_s15 }
 0x166   :  { %461 = vrot.lane.b32.xlu0 %v453_v12, %s1967_s17  ;;  %v1807_v13 = vpack.c.bf16 %v454_v10, %v453_v12 }
 0x169   :  { %455 = vrot.lane.b32.xlu1 %v453_v12, %s1966_s15 }
 0x16a   :  { %766 = vrot.lane.b32.xlu0 %v307_v51, %s1967_s17 }
 0x16d   :  { %463 = vrot.lane.b32.xlu1 %v454_v10, %s1967_s17 }
 0x171   :  { %768 = vrot.lane.b32.xlu1 %v353_v50, %s1967_s17 }
 0x1d7   :  { %v458_v16 = vpop.permute.xlu1 %457 }
 0x1d8   :  { %v460_v19 = vmul.f32 %v458_v16, %v2262_v17  ;;  %v462_v21 = vpop.permute.xlu0 %461 }
 0x1d9   :  { %v465_v27 = vmul.f32 %v462_v21, %v2224_v55 }
 0x1db   :  { %v456_v18 = vpop.permute.xlu1 %455 }
 0x1dc   :  { %v459_v20 = vmul.f32 %v456_v18, %v2218_v52  ;;  %v767_v26 = vpop.permute.xlu0 %766 }
 0x1de   :  { %v1803_v23 = vpack.c.bf16 %v460_v19, %v459_v20 }
 0x1df   :  { %v464_v24 = vpop.permute.xlu1 %463 }
 0x1e0   :  { %v466_v25 = vmul.f32 %v464_v24, %v2269_v22  ;;  %1804 = vmatprep.subr.bf16.mxu1 %v1803_v23 }
 0x1e1   :  { %1806 = vmatpush3.bf16.msra.mxu1 %v1803_v23 }
 0x1e2   :  { %1808 = vmatprep.subr.bf16.mxu1 %v1807_v13  ;;  %v1811_v31 = vpack.c.bf16 %v466_v25, %v465_v27 }
 0x1e3   :  { %v769_v30 = vpop.permute.xlu1 %768 }
 0x1e4   :  { %v771_v32 = vsel %vm770_vm12, %v767_v26, %v769_v30  ;;  %v772_v33 = vsel %vm770_vm12, %v769_v30, %v767_v26 }
 0x1e5   :  { %v773_v34 = vmul.f32 %v771_v32, %v2277_v28  ;;  %v774_v35 = vmul.f32 %v772_v33, %v2282_v29  ;;  %1810 = vmatpush3.bf16.msra.mxu1 %v1807_v13 }
 0x1e6   :  { %1812 = vmatprep.subr.bf16.mxu1 %v1811_v31 }
 0x1e7   :  { %787 = vmatprep.subr.mxu0 %v774_v35  ;;  %v2358_v35 = vld [vmem:[%s3031_s30 + $0x18] sm:$0xff] }
 0x1e8   :  { %788 = vmatpush1.msra.mxu0 %v773_v34  ;;  %v2353_v34 = vld [vmem:[%s3031_s30 + $0x10] sm:$0xff] }
 0x1e9   :  { %1814 = vmatpush3.bf16.msra.mxu1 %v1811_v31  ;;  %1702 = vmatmul.mubr.msk.f32.vlgmr.msra.gmra.mrb[2].mxu0 %vm371_vm8, %v775_v36 }
 0x1ea   :  { %853 = vmatprep.mubr.f32.mxu0 %v1968_v14 }
 0x1ec   :  { %1767 = vmatmul.mubr.msk.f32.vlgmr.msra.gmra.mrb[0].mxu1 %vm469_vm11, %v468_v37 }
 0x1ed   :  { %1703 = vmatmul.mubr.msk.f32.gmra.mrb[4].mxu0 %vm371_vm8, %v776_v38  ;;  %1781 = vmatprep.mubr.msk.f32.mxu1 %vm469_vm11, %v565_v56 }
 0x1ee   :  { %976 = vmatprep.mubr.f32.mxu0 %v1968_v14 }
 0x2bc   :  { %v849_v39 = vpop.f32.mrb[2].mxu0 }
 0x2bd   :  { %v860_v40 = vmax.f32 %v849_v39, 0.0  ;;  %v851_v41 = vpop.f32.mrb[3].mxu0 }
 0x2be   :  { %v861_v46 = vmax.f32 %v851_v41, 0.0 }
 0x2bf   :  { %864 = vrot.lane.b32.xlu0 %v860_v40, %s1966_s15  ;;  %v1768_v42 = vpop.f32.mrb[0].mxu1 }
 0x2c0   :  { %v855_v43 = vpop.f32.mrb[4].mxu0  ;;  %v552_v44 = vmax.f32 %v1768_v42, 0.0  ;;  %v542_v45 = vpop.f32.mrb[1].mxu1 }
 0x2c1   :  { %v862_v47 = vmax.f32 %v855_v43, 0.0  ;;  %v857_v48 = vpop.f32.mrb[5].mxu0  ;;  %v551_v49 = vmax.f32 %v542_v45, 0.0  ;;  %v566_v43 = vld [vmem:[%s3033_s19 + $0x8] sm:$0xff] }
 0x2c2   :  { %v863_v50 = vmax.f32 %v857_v48, 0.0  ;;  %v898_v48 = vld [vmem:[%s3034_s0 + $0x10] sm:$0xff] }
 0x2c3   :  { %v1846_v51 = vpack.c.bf16 %v862_v47, %v860_v40  ;;  %868 = vrot.lane.b32.xlu0 %v861_v46, %s1966_s15  ;;  %866 = vrot.lane.b32.xlu1 %v862_v47, %s1966_s15  ;;  %v1819_v53 = vpack.c.bf16 %v552_v44, %v551_v49 }
 0x2c4   :  { %v1844_v54 = vpack.c.bf16 %v863_v50, %v861_v46 }
 0x2c7   :  { %553 = vrot.lane.b32.xlu0 %v551_v49, %s1966_s15  ;;  %870 = vrot.lane.b32.xlu1 %v863_v50, %s1966_s15 }
 0x2cb   :  { %880 = vrot.lane.b32.xlu0 %v860_v40, %s1967_s17  ;;  %555 = vrot.lane.b32.xlu1 %v552_v44, %s1966_s15 }
 0x2cf   :  { %559 = vrot.lane.b32.xlu0 %v551_v49, %s1967_s17  ;;  %561 = vrot.lane.b32.xlu1 %v552_v44, %s1967_s17  ;;  %v899_v49 = vld [vmem:[%s3034_s0 + $0x18] sm:$0xff] }
 0x2d3   :  { %884 = vrot.lane.b32.xlu0 %v861_v46, %s1967_s17  ;;  %882 = vrot.lane.b32.xlu1 %v862_v47, %s1967_s17  ;;  %v896_v46 = vld [vmem:[%s3034_s0] sm:$0xff]  ;;  %v897_v47 = vld [vmem:[%s3034_s0 + $0x8] sm:$0xff] }
 0x2d7   :  { %886 = vrot.lane.b32.xlu1 %v863_v50, %s1967_s17 }
 0x331   :  { %v865_v57 = vpop.permute.xlu0 %864 }
 0x335   :  { %v869_v58 = vpop.permute.xlu0 %868  ;;  %v867_v59 = vpop.permute.xlu1 %866 }
 0x336   :  { %v872_v60 = vsel %vm761_vm10, %v865_v57, %v869_v58  ;;  %v874_v61 = vsel %vm761_vm10, %v869_v58, %v865_v57 }
 0x337   :  { %v876_v9 = vmul.f32 %v874_v61, %v2235_v62  ;;  %v877_v10 = vmul.f32 %v872_v60, %v2242_v0  ;;  %v1969_v60 = vmov 0.0|0.0  }
 0x339   :  { %v554_v2 = vpop.permute.xlu0 %553  ;;  %v871_v3 = vpop.permute.xlu1 %870 }
 0x33a   :  { %v873_v4 = vsel %vm761_vm10, %v867_v59, %v871_v3  ;;  %v875_v8 = vsel %vm761_vm10, %v871_v3, %v867_v59  ;;  %v557_v13 = vmul.f32 %v554_v2, %v2218_v52 }
 0x33b   :  { %v878_v11 = vmul.f32 %v875_v8, %v2327_v63  ;;  %v879_v12 = vmul.f32 %v873_v4, %v2332_v1 }
 0x33d   :  { %v1842_v15 = vpack.c.bf16 %v878_v11, %v876_v9  ;;  %v881_v16 = vpop.permute.xlu0 %880  ;;  %v556_v18 = vpop.permute.xlu1 %555  ;;  %v1840_v19 = vpack.c.bf16 %v879_v12, %v877_v10 }
 0x33e   :  { %v558_v20 = vmul.f32 %v556_v18, %v2262_v17 }
 0x33f   :  { %1841 = vmatprep.subr.bf16.mxu0 %v1840_v19 }
 0x340   :  { %v1815_v21 = vpack.c.bf16 %v558_v20, %v557_v13  ;;  %1843 = vmatpush1.bf16.msra.mxu0 %v1842_v15 }
 0x341   :  { %v560_v23 = vpop.permute.xlu0 %559  ;;  %v562_v24 = vpop.permute.xlu1 %561  ;;  %1845 = vmatprep.subr.bf16.mxu0 %v1844_v54 }
 0x342   :  { %v563_v25 = vmul.f32 %v560_v23, %v2224_v55  ;;  %v564_v26 = vmul.f32 %v562_v24, %v2269_v22  ;;  %1816 = vmatprep.subr.bf16.mxu1 %v1815_v21 }
 0x343   :  { %1818 = vmatpush3.bf16.msra.mxu1 %v1815_v21 }
 0x344   :  { %1820 = vmatprep.subr.bf16.mxu1 %v1819_v53  ;;  %1847 = vmatpush1.bf16.msra.mxu0 %v1846_v51  ;;  %v1823_v31 = vpack.c.bf16 %v564_v26, %v563_v25 }
 0x345   :  { %v885_v27 = vpop.permute.xlu0 %884  ;;  %v883_v30 = vpop.permute.xlu1 %882 }
 0x346   :  { %v888_v32 = vsel %vm770_vm12, %v881_v16, %v885_v27  ;;  %v890_v33 = vsel %vm770_vm12, %v885_v27, %v881_v16 }
 0x347   :  { %1822 = vmatpush3.bf16.msra.mxu1 %v1819_v53  ;;  %v892_v39 = vmul.f32 %v888_v32, %v2277_v28  ;;  %v893_v40 = vmul.f32 %v890_v33, %v2282_v29 }
 0x348   :  { %1824 = vmatprep.subr.bf16.mxu1 %v1823_v31 }
 0x349   :  { %v887_v36 = vpop.permute.xlu1 %886 }
 0x34a   :  { %v889_v37 = vsel %vm770_vm12, %v883_v30, %v887_v36  ;;  %v891_v38 = vsel %vm770_vm12, %v887_v36, %v883_v30 }
 0x34b   :  { %v894_v41 = vmul.f32 %v889_v37, %v2353_v34  ;;  %v895_v42 = vmul.f32 %v891_v38, %v2358_v35  ;;  %1826 = vmatpush3.bf16.msra.mxu1 %v1823_v31 }
 0x34c   :  { %1827 = vmatprep.subr.bf16.mxu1 %v1969_v60 }
 0x34d   :  { %v1850_v44 = vpack.c.bf16 %v894_v41, %v892_v39  ;;  %v1848_v45 = vpack.c.bf16 %v895_v42, %v893_v40 }
 0x34e   :  { %1782 = vmatmul.mubr.msk.f32.vlgmr.msra.gmra.mrb[2].mxu1 %vm469_vm11, %v566_v43 }
 0x34f   :  { %1849 = vmatprep.subr.bf16.mxu0 %v1848_v45  ;;  %1796 = vmatprep.mubr.msk.f32.mxu1 %vm1970_vm13, %v1968_v14 }
 0x350   :  { %1851 = vmatpush1.bf16.msra.mxu0 %v1850_v44 }
 0x353   :  { %1704 = vmatmul.mubr.msk.f32.vlgmr.msra.gmra.mrb[6].mxu0 %vm469_vm11, %v896_v46 }
 0x354   :  { %982 = vmatprep.mubr.f32.mxu0 %v1968_v14 }
 0x357   :  { %1705 = vmatmul.mubr.msk.f32.gmra.mrb[8].mxu0 %vm469_vm11, %v897_v47 }
 0x358   :  { %988 = vmatprep.mubr.f32.mxu0 %v1968_v14 }
 0x35b   :  { %1706 = vmatmul.mubr.msk.f32.gmra.mrb[10].mxu0 %vm469_vm11, %v898_v48 }
 0x35c   :  { %994 = vmatprep.mubr.f32.mxu0 %v1968_v14 }
 0x35f   :  { %1707 = vmatmul.mubr.msk.f32.gmra.mrb[12].mxu0 %vm469_vm11, %v899_v49 }
 0x360   :  { %1331 = vmatprep.mubr.f32.mxu0 %v1968_v14 }
 0x421   :  { %v1783_v50 = vpop.f32.mrb[2].mxu1 }
 0x422   :  { %v2392_v51 = vmax.f32 %v1783_v50, 0.0  ;;  %v639_v53 = vpop.f32.mrb[3].mxu1  ;;  %v662_v50 = vld [vmem:[%s3035_s20] sm:$0x1] }
 0x423   :  { %v2394_v54 = vmax.f32 %v639_v53, 0.0 }
 0x425   :  { %v1831_v56 = vpack.c.bf16 %v2392_v51, %v2394_v54 }
 0x426   :  { %v978_v57 = vpop.f32.mrb[6].mxu0 }
 0x427   :  { %v2398_v58 = vmax.f32 %v978_v57, 0.0  ;;  %v980_v59 = vpop.f32.mrb[7].mxu0 }
 0x428   :  { %v2405_v4 = vmax.f32 %v980_v59, 0.0  ;;  %v2505_v59 = vld [vmem:[%s3029_s24 + $0x30] sm:$0xff] }
 0x429   :  { %1009 = vrot.lane.b32.xlu0 %v2398_v58, %s1966_s15 }
 0x42a   :  { %v984_v61 = vpop.f32.mrb[8].mxu0 }
 0x42b   :  { %v2403_v2 = vmax.f32 %v984_v61, 0.0  ;;  %v986_v3 = vpop.f32.mrb[9].mxu0 }
 0x42c   :  { %v2407_v8 = vmax.f32 %v986_v3, 0.0 }
 0x42d   :  { %v1862_v9 = vpack.c.bf16 %v2403_v2, %v2398_v58  ;;  %650 = vrot.lane.b32.xlu0 %v2394_v54, %s1966_s15  ;;  %1011 = vrot.lane.b32.xlu1 %v2403_v2, %s1966_s15 }
 0x42e   :  { %v990_v10 = vpop.f32.mrb[10].mxu0  ;;  %v1860_v11 = vpack.c.bf16 %v2407_v8, %v2405_v4 }
 0x42f   :  { %v992_v12 = vpop.f32.mrb[11].mxu0  ;;  %v2421_v13 = vmax.f32 %v990_v10, 0.0 }
 0x430   :  { %v2423_v15 = vmax.f32 %v992_v12, 0.0 }
 0x431   :  { %1017 = vrot.lane.b32.xlu0 %v2405_v4, %s1966_s15  ;;  %652 = vrot.lane.b32.xlu1 %v2392_v51, %s1966_s15 }
 0x432   :  { %v996_v16 = vpop.f32.mrb[12].mxu0 }
 0x433   :  { %v2426_v18 = vmax.f32 %v996_v16, 0.0  ;;  %v998_v19 = vpop.f32.mrb[13].mxu0 }
 0x434   :  { %v2428_v20 = vmax.f32 %v998_v19, 0.0 }
 0x435   :  { %656 = vrot.lane.b32.xlu0 %v2394_v54, %s1967_s17  ;;  %658 = vrot.lane.b32.xlu1 %v2392_v51, %s1967_s17  ;;  %v1866_v21 = vpack.c.bf16 %v2426_v18, %v2421_v13  ;;  %v2491_v51 = vld [vmem:[%s3029_s24 + $0x20] sm:$0xff]  ;;  %v2496_v54 = vld [vmem:[%s3029_s24 + $0x28] sm:$0xff] }
 0x436   :  { %v1864_v23 = vpack.c.bf16 %v2428_v20, %v2423_v15 }
 0x439   :  { %1019 = vrot.lane.b32.xlu1 %v2407_v8, %s1966_s15  ;;  %1013 = vrot.lane.b32.xlu0 %v2421_v13, %s1966_s15 }
 0x43d   :  { %1021 = vrot.lane.b32.xlu0 %v2423_v15, %s1966_s15  ;;  %1015 = vrot.lane.b32.xlu1 %v2426_v18, %s1966_s15 }
 0x441   :  { %1041 = vrot.lane.b32.xlu0 %v2398_v58, %s1967_s17  ;;  %1023 = vrot.lane.b32.xlu1 %v2428_v20, %s1966_s15 }
 0x445   :  { %1049 = vrot.lane.b32.xlu0 %v2405_v4, %s1967_s17  ;;  %1043 = vrot.lane.b32.xlu1 %v2403_v2, %s1967_s17 }
 0x449   :  { %1045 = vrot.lane.b32.xlu0 %v2421_v13, %s1967_s17  ;;  %1051 = vrot.lane.b32.xlu1 %v2407_v8, %s1967_s17 }
 0x44d   :  { %1053 = vrot.lane.b32.xlu0 %v2423_v15, %s1967_s17  ;;  %1047 = vrot.lane.b32.xlu1 %v2426_v18, %s1967_s17 }
 0x451   :  { %1055 = vrot.lane.b32.xlu1 %v2428_v20, %s1967_s17  ;;  %v2563_v20 = vld [vmem:[%s3031_s30 + $0x30] sm:$0xff] }
 0x49b   :  { %v1010_v24 = vpop.permute.xlu0 %1009 }
 0x49f   :  { %v651_v25 = vpop.permute.xlu0 %650  ;;  %v1012_v26 = vpop.permute.xlu1 %1011 }
 0x4a0   :  { %v654_v27 = vmul.f32 %v651_v25, %v2218_v52 }
 0x4a3   :  { %v1018_v30 = vpop.permute.xlu0 %1017  ;;  %v653_v31 = vpop.permute.xlu1 %652 }
 0x4a4   :  { %v655_v32 = vmul.f32 %v653_v31, %v2262_v17  ;;  %v1025_v38 = vsel %vm761_vm10, %v1010_v24, %v1018_v30  ;;  %v1029_v43 = vsel %vm761_vm10, %v1018_v30, %v1010_v24 }
 0x4a5   :  { %v1034_v44 = vmul.f32 %v1025_v38, %v2242_v0  ;;  %v1033_v49 = vmul.f32 %v1029_v43, %v2235_v62 }
 0x4a6   :  { %v1828_v33 = vpack.c.bf16 %v655_v32, %v654_v27 }
 0x4a7   :  { %v657_v36 = vpop.permute.xlu0 %656  ;;  %v659_v37 = vpop.permute.xlu1 %658 }
 0x4a8   :  { %1829 = vmatpush3.bf16.msra.mxu1 %v1828_v33  ;;  %v660_v39 = vmul.f32 %v657_v36, %v2224_v55  ;;  %v661_v40 = vmul.f32 %v659_v37, %v2269_v22 }
 0x4a9   :  { %1830 = vmatprep.subr.bf16.mxu1 %v1969_v60 }
 0x4aa   :  { %v1834_v22 = vpack.c.bf16 %v661_v40, %v660_v39 }
 0x4ab   :  { %v1020_v41 = vpop.permute.xlu1 %1019  ;;  %v1014_v42 = vpop.permute.xlu0 %1013 }
 0x4ac   :  { %v1026_v52 = vsel %vm761_vm10, %v1012_v26, %v1020_v41  ;;  %v1030_v17 = vsel %vm761_vm10, %v1020_v41, %v1012_v26  ;;  %1832 = vmatpush3.bf16.msra.mxu1 %v1831_v56 }
 0x4ad   :  { %v1036_v55 = vmul.f32 %v1026_v52, %v2332_v1  ;;  %1833 = vmatprep.subr.bf16.mxu1 %v1969_v60  ;;  %v1035_v45 = vmul.f32 %v1030_v17, %v2327_v63  ;;  %v2510_v60 = vld [vmem:[%s3029_s24 + $0x38] sm:$0xff] }
 0x4af   :  { %v1022_v46 = vpop.permute.xlu0 %1021  ;;  %v1016_v47 = vpop.permute.xlu1 %1015  ;;  %v1852_v48 = vpack.c.bf16 %v1036_v55, %v1034_v44  ;;  %v1854_v53 = vpack.c.bf16 %v1035_v45, %v1033_v49  ;;  %v1075_v49 = vld [vmem:[%s2982_s12 + $0x10] sm:$0xff] }
 0x4b0   :  { %1835 = vmatpush3.bf16.msra.mxu1 %v1834_v22  ;;  %v1027_v56 = vsel %vm761_vm10, %v1014_v42, %v1022_v46  ;;  %v1031_v57 = vsel %vm761_vm10, %v1022_v46, %v1014_v42  ;;  %v2545_v42 = vld [vmem:[%s3031_s30 + $0x20] sm:$0xff] }
 0x4b1   :  { %1853 = vmatprep.subr.bf16.mxu1 %v1852_v48  ;;  %v1037_v16 = vmul.f32 %v1031_v57, %v2491_v51  ;;  %v1038_v19 = vmul.f32 %v1027_v56, %v2496_v54  ;;  %v1074_v48 = vld [vmem:[%s2982_s12 + $0x8] sm:$0xff] }
 0x4b3   :  { %v1042_v61 = vpop.permute.xlu0 %1041  ;;  %v1024_v3 = vpop.permute.xlu1 %1023  ;;  %1797 = vmatmul.mubr.msk.f32.vlgmr.msra.gmra.mrb[4].mxu1 %vm469_vm11, %v662_v50  ;;  %v1076_v50 = vld [vmem:[%s2982_s12 + $0x18] sm:$0xff] }
 0x4b4   :  { %v1028_v10 = vsel %vm761_vm10, %v1016_v47, %v1024_v3  ;;  %v1032_v12 = vsel %vm761_vm10, %v1024_v3, %v1016_v47  ;;  %1855 = vmatpush1.bf16.msra.mxu1 %v1854_v53  ;;  %1154 = vmatprep.mubr.f32.mxu1 %v1968_v14  ;;  %v1073_v47 = vld [vmem:[%s2982_s12] sm:$0xff] }
 0x4b5   :  { %v1039_v24 = vmul.f32 %v1032_v12, %v2505_v59  ;;  %v1040_v25 = vmul.f32 %v1028_v10, %v2510_v60 }
 0x4b7   :  { %v1858_v26 = vpack.c.bf16 %v1039_v24, %v1037_v16  ;;  %v1050_v27 = vpop.permute.xlu0 %1049  ;;  %v1044_v30 = vpop.permute.xlu1 %1043  ;;  %v1856_v31 = vpack.c.bf16 %v1040_v25, %v1038_v19 }
 0x4b8   :  { %v1061_v36 = vsel %vm770_vm12, %v1050_v27, %v1042_v61  ;;  %v1057_v4 = vsel %vm770_vm12, %v1042_v61, %v1050_v27 }
 0x4b9   :  { %1857 = vmatprep.subr.bf16.mxu1 %v1856_v31  ;;  %v1066_v8 = vmul.f32 %v1061_v36, %v2282_v29  ;;  %v1065_v2 = vmul.f32 %v1057_v4, %v2277_v28 }
 0x4ba   :  { %1859 = vmatpush1.bf16.msra.mxu1 %v1858_v26 }
 0x4bb   :  { %v1046_v32 = vpop.permute.xlu0 %1045  ;;  %1861 = vmatprep.subr.bf16.mxu1 %v1860_v11  ;;  %v1052_v33 = vpop.permute.xlu1 %1051 }
 0x4bc   :  { %v1062_v37 = vsel %vm770_vm12, %v1052_v33, %v1044_v30  ;;  %v1058_v38 = vsel %vm770_vm12, %v1044_v30, %v1052_v33 }
 0x4bd   :  { %v1068_v39 = vmul.f32 %v1062_v37, %v2358_v35  ;;  %v1067_v41 = vmul.f32 %v1058_v38, %v2353_v34 }
 0x4be   :  { %1863 = vmatpush1.bf16.msra.mxu1 %v1862_v9  ;;  %v2551_v9 = vld [vmem:[%s3031_s30 + $0x28] sm:$0xff] }
 0x4bf   :  { %v1054_v11 = vpop.permute.xlu0 %1053  ;;  %v1048_v40 = vpop.permute.xlu1 %1047  ;;  %1865 = vmatprep.subr.bf16.mxu1 %v1864_v23  ;;  %v1868_v58 = vpack.c.bf16 %v1068_v39, %v1066_v8  ;;  %v2568_v23 = vld [vmem:[%s3031_s30 + $0x38] sm:$0xff]  ;;  %v1870_v43 = vpack.c.bf16 %v1067_v41, %v1065_v2 }
 0x4c0   :  { %v1059_v52 = vsel %vm770_vm12, %v1046_v32, %v1054_v11  ;;  %v1063_v15 = vsel %vm770_vm12, %v1054_v11, %v1046_v32 }
 0x4c1   :  { %v1069_v18 = vmul.f32 %v1059_v52, %v2545_v42 }
 0x4c2   :  { %1867 = vmatpush1.bf16.msra.mxu1 %v1866_v21  ;;  %v1070_v21 = vmul.f32 %v1063_v15, %v2551_v9 }
 0x4c3   :  { %v1056_v17 = vpop.permute.xlu1 %1055  ;;  %1869 = vmatprep.subr.bf16.mxu1 %v1868_v58 }
 0x4c4   :  { %v1060_v44 = vsel %vm770_vm12, %v1048_v40, %v1056_v17  ;;  %v1064_v13 = vsel %vm770_vm12, %v1056_v17, %v1048_v40 }
 0x4c5   :  { %v1071_v55 = vmul.f32 %v1060_v44, %v2563_v20  ;;  %v1072_v22 = vmul.f32 %v1064_v13, %v2568_v23 }
 0x4c6   :  { %1871 = vmatpush1.bf16.msra.mxu1 %v1870_v43 }
 0x4c7   :  { %v1874_v45 = vpack.c.bf16 %v1071_v55, %v1069_v18  ;;  %v1872_v46 = vpack.c.bf16 %v1072_v22, %v1070_v21 }
 0x4c9   :  { %1873 = vmatprep.subr.bf16.mxu1 %v1872_v46 }
 0x4ca   :  { %1875 = vmatpush1.bf16.msra.mxu1 %v1874_v45 }
 0x4cd   :  { %1708 = vmatmul.mubr.msk.f32.vlgmr.msra.gmra.mrb[6].mxu1 %vm1077_vm14, %v1073_v47 }
 0x4ce   :  { %1160 = vmatprep.mubr.f32.mxu1 %v1968_v14 }
 0x4d1   :  { %1709 = vmatmul.mubr.msk.f32.gmra.mrb[8].mxu1 %vm1077_vm14, %v1074_v48 }
 0x4d2   :  { %1166 = vmatprep.mubr.f32.mxu1 %v1968_v14 }
 0x4d5   :  { %1710 = vmatmul.mubr.msk.f32.gmra.mrb[10].mxu1 %vm1077_vm14, %v1075_v49 }
 0x4d6   :  { %1172 = vmatprep.mubr.f32.mxu1 %v1968_v14 }
 0x4d9   :  { %1711 = vmatmul.mubr.msk.f32.gmra.mrb[12].mxu1 %vm1077_vm14, %v1076_v50 }
 0x4da   :  { %1496 = vmatprep.mubr.f32.mxu1 %v1968_v14 }
 0x586   :  { %v2598_v53 = vpop.f32.mrb[4].mxu1 }
 0x587   :  { %v736_v56 = vmax.f32 %v2598_v53, 0.0  ;;  %v1798_v57 = vpop.f32.mrb[5].mxu1 }
 0x589   :  { %1624 = vst [vmem:[%s2995_s25] sm:$0x1] %v736_v56 }
 0x5a0   :  { %v1156_v61 = vpop.f32.mrb[6].mxu1 }
 0x5a1   :  { %v2606_v3 = vmax.f32 %v1156_v61, 0.0  ;;  %v1158_v10 = vpop.f32.mrb[7].mxu1 }
 0x5a2   :  { %v2610_v16 = vmax.f32 %v1158_v10, 0.0 }
 0x5a3   :  { %1187 = vrot.lane.b32.xlu0 %v2606_v3, %s1966_s15 }
 0x5a4   :  { %v1162_v12 = vpop.f32.mrb[8].mxu1 }
 0x5a5   :  { %v2612_v19 = vmax.f32 %v1162_v12, 0.0  ;;  %v1164_v24 = vpop.f32.mrb[9].mxu1 }
 0x5a6   :  { %v2614_v25 = vmax.f32 %v1164_v24, 0.0 }
 0x5a7   :  { %v1886_v26 = vpack.c.bf16 %v2612_v19, %v2606_v3  ;;  %1195 = vrot.lane.b32.xlu0 %v2610_v16, %s1966_s15  ;;  %1189 = vrot.lane.b32.xlu1 %v2612_v19, %s1966_s15 }
 0x5a8   :  { %v1168_v27 = vpop.f32.mrb[10].mxu1  ;;  %v1884_v30 = vpack.c.bf16 %v2614_v25, %v2610_v16 }
 0x5a9   :  { %v2624_v31 = vmax.f32 %v1168_v27, 0.0  ;;  %v1170_v32 = vpop.f32.mrb[11].mxu1 }
 0x5aa   :  { %v2630_v36 = vmax.f32 %v1170_v32, 0.0 }
 0x5ab   :  { %1197 = vrot.lane.b32.xlu1 %v2614_v25, %s1966_s15  ;;  %1191 = vrot.lane.b32.xlu0 %v2624_v31, %s1966_s15 }
 0x5ac   :  { %v1174_v33 = vpop.f32.mrb[12].mxu1 }
 0x5ad   :  { %v2632_v37 = vmax.f32 %v1174_v33, 0.0  ;;  %v1176_v38 = vpop.f32.mrb[13].mxu1 }
 0x5ae   :  { %v1186_v39 = vmax.f32 %v1176_v38, 0.0 }
 0x5af   :  { %v1890_v4 = vpack.c.bf16 %v2632_v37, %v2624_v31  ;;  %1199 = vrot.lane.b32.xlu0 %v2630_v36, %s1966_s15  ;;  %1193 = vrot.lane.b32.xlu1 %v2632_v37, %s1966_s15 }
 0x5b0   :  { %v1888_v8 = vpack.c.bf16 %v1186_v39, %v2630_v36 }
 0x5b3   :  { %1219 = vrot.lane.b32.xlu0 %v2606_v3, %s1967_s17  ;;  %1201 = vrot.lane.b32.xlu1 %v1186_v39, %s1966_s15 }
 0x5b7   :  { %1227 = vrot.lane.b32.xlu0 %v2610_v16, %s1967_s17  ;;  %1221 = vrot.lane.b32.xlu1 %v2612_v19, %s1967_s17 }
 0x5bb   :  { %1223 = vrot.lane.b32.xlu0 %v2624_v31, %s1967_s17  ;;  %1229 = vrot.lane.b32.xlu1 %v2614_v25, %s1967_s17 }
 0x5bf   :  { %1231 = vrot.lane.b32.xlu0 %v2630_v36, %s1967_s17  ;;  %1225 = vrot.lane.b32.xlu1 %v2632_v37, %s1967_s17 }
 0x5c3   :  { %1233 = vrot.lane.b32.xlu1 %v1186_v39, %s1967_s17 }
 0x615   :  { %v1188_v11 = vpop.permute.xlu0 %1187 }
 0x619   :  { %v1196_v40 = vpop.permute.xlu0 %1195  ;;  %v1190_v41 = vpop.permute.xlu1 %1189 }
 0x61a   :  { %v1203_v58 = vsel %vm761_vm10, %v1188_v11, %v1196_v40  ;;  %v1207_v2 = vsel %vm761_vm10, %v1196_v40, %v1188_v11 }
 0x61b   :  { %v1211_v44 = vmul.f32 %v1207_v2, %v2235_v62  ;;  %v1212_v13 = vmul.f32 %v1203_v58, %v2242_v0 }
 0x61d   :  { %v1198_v52 = vpop.permute.xlu1 %1197  ;;  %v1192_v15 = vpop.permute.xlu0 %1191 }
 0x61e   :  { %v1204_v17 = vsel %vm761_vm10, %v1190_v41, %v1198_v52  ;;  %v1208_v43 = vsel %vm761_vm10, %v1198_v52, %v1190_v41 }
 0x61f   :  { %v1213_v18 = vmul.f32 %v1208_v43, %v2327_v63  ;;  %v1214_v21 = vmul.f32 %v1204_v17, %v2332_v1  ;;  %v1508_v43 = vld [vmem:[%s3036_s7 + $0x18] sm:$0xff] }
 0x621   :  { %v1878_v55 = vpack.c.bf16 %v1213_v18, %v1211_v44  ;;  %v1200_v22 = vpop.permute.xlu0 %1199  ;;  %v1194_v45 = vpop.permute.xlu1 %1193  ;;  %v1876_v46 = vpack.c.bf16 %v1214_v21, %v1212_v13 }
 0x622   :  { %v1205_v47 = vsel %vm761_vm10, %v1192_v15, %v1200_v22  ;;  %v1209_v48 = vsel %vm761_vm10, %v1200_v22, %v1192_v15  ;;  %v1507_v22 = vld [vmem:[%s3036_s7 + $0x10] sm:$0xff] }
 0x623   :  { %1877 = vmatprep.subr.bf16.mxu0 %v1876_v46  ;;  %v1215_v57 = vmul.f32 %v1209_v48, %v2491_v51  ;;  %v1216_v61 = vmul.f32 %v1205_v47, %v2496_v54  ;;  %v1512_v46 = vld [vmem:[%s3036_s7 + $0x38] sm:$0xff]  ;;  %v1251_v47 = vld [vmem:[%s2983_s13] sm:$0xff] }
 0x624   :  { %1879 = vmatpush1.bf16.msra.mxu0 %v1878_v55  ;;  %v1505_v55 = vld [vmem:[%s3036_s7] sm:$0xff] }
 0x625   :  { %v1220_v49 = vpop.permute.xlu0 %1219  ;;  %v1202_v62 = vpop.permute.xlu1 %1201  ;;  %v1926_v48 = vpack.c.bf16 %v1507_v22, %v1505_v55  ;;  %v1535_v55 = vld [vmem:[%s3036_s7 + $0xf0] sm:$0xff] }
 0x626   :  { %v1206_v0 = vsel %vm761_vm10, %v1194_v45, %v1202_v62  ;;  %v1210_v50 = vsel %vm761_vm10, %v1202_v62, %v1194_v45  ;;  %v1510_v45 = vld [vmem:[%s3036_s7 + $0x28] sm:$0xff]  ;;  %v1509_v62 = vld [vmem:[%s3036_s7 + $0x20] sm:$0xff] }
 0x627   :  { %v1217_v10 = vmul.f32 %v1210_v50, %v2505_v59  ;;  %v1218_v12 = vmul.f32 %v1206_v0, %v2510_v60  ;;  %v1511_v0 = vld [vmem:[%s3036_s7 + $0x30] sm:$0xff]  ;;  %v1514_v50 = vld [vmem:[%s3036_s7 + $0x48] sm:$0xff] }
 0x629   :  { %v1882_v16 = vpack.c.bf16 %v1217_v10, %v1215_v57  ;;  %v1228_v24 = vpop.permute.xlu0 %1227  ;;  %v1222_v25 = vpop.permute.xlu1 %1221  ;;  %v1880_v27 = vpack.c.bf16 %v1218_v12, %v1216_v61  ;;  %v1516_v57 = vld [vmem:[%s3036_s7 + $0x58] sm:$0xff]  ;;  %v1252_v61 = vld [vmem:[%s2983_s13 + $0x8] sm:$0xff]  ;;  %v1930_v10 = vpack.c.bf16 %v1511_v0, %v1509_v62 }
 0x62a   :  { %v1239_v36 = vsel %vm770_vm12, %v1228_v24, %v1220_v49  ;;  %v1235_v40 = vsel %vm770_vm12, %v1220_v49, %v1228_v24  ;;  %v1928_v49 = vpack.c.bf16 %v1512_v46, %v1510_v45  ;;  %v1932_v12 = vpack.c.bf16 %v1516_v57, %v1514_v50  ;;  %v1515_v24 = vld [vmem:[%s3036_s7 + $0x50] sm:$0xff] }
 0x62b   :  { %1881 = vmatprep.subr.bf16.mxu0 %v1880_v27  ;;  %v1243_v15 = vmul.f32 %v1235_v40, %v2277_v28  ;;  %v1506_v28 = vld [vmem:[%s3036_s7 + $0x8] sm:$0xff]  ;;  %v1520_v27 = vld [vmem:[%s3036_s7 + $0x78] sm:$0xff] }
 0x62c   :  { %1883 = vmatpush1.bf16.msra.mxu0 %v1882_v16  ;;  %v1924_v21 = vpack.c.bf16 %v1508_v43, %v1506_v28  ;;  %v1513_v16 = vld [vmem:[%s3036_s7 + $0x40] sm:$0xff]  ;;  %v1524_v40 = vld [vmem:[%s3036_s7 + $0x98] sm:$0xff] }
 0x62d   :  { %v1224_v32 = vpop.permute.xlu0 %1223  ;;  %1885 = vmatprep.subr.bf16.mxu0 %v1884_v30  ;;  %v1230_v33 = vpop.permute.xlu1 %1229  ;;  %v1244_v30 = vmul.f32 %v1239_v36, %v2282_v29  ;;  %v1532_v28 = vld [vmem:[%s3036_s7 + $0xd8] sm:$0xff] }
 0x62e   :  { %v1240_v38 = vsel %vm770_vm12, %v1230_v33, %v1222_v25  ;;  %v1236_v39 = vsel %vm770_vm12, %v1222_v25, %v1230_v33  ;;  %v1518_v25 = vld [vmem:[%s3036_s7 + $0x68] sm:$0xff]  ;;  %v1934_v33 = vpack.c.bf16 %v1515_v24, %v1513_v16 }
 0x62f   :  { %v1246_v11 = vmul.f32 %v1240_v38, %v2358_v35  ;;  %v1245_v2 = vmul.f32 %v1236_v39, %v2353_v34  ;;  %v1936_v36 = vpack.c.bf16 %v1520_v27, %v1518_v25  ;;  %v1517_v38 = vld [vmem:[%s3036_s7 + $0x60] sm:$0xff]  ;;  %v1519_v39 = vld [vmem:[%s3036_s7 + $0x70] sm:$0xff] }
 0x630   :  { %1887 = vmatpush1.bf16.msra.mxu0 %v1886_v26 }
 0x631   :  { %v1232_v41 = vpop.permute.xlu0 %1231  ;;  %v1226_v58 = vpop.permute.xlu1 %1225  ;;  %1889 = vmatprep.subr.bf16.mxu0 %v1888_v8  ;;  %v1892_v52 = vpack.c.bf16 %v1246_v11, %v1244_v30  ;;  %v1894_v29 = vpack.c.bf16 %v1245_v2, %v1243_v15  ;;  %v1522_v11 = vld [vmem:[%s3036_s7 + $0x88] sm:$0xff]  ;;  %v1254_v30 = vld [vmem:[%s2983_s13 + $0x18] sm:$0xff]  ;;  %v1521_v2 = vld [vmem:[%s3036_s7 + $0x80] sm:$0xff] }
 0x632   :  { %v1237_v17 = vsel %vm770_vm12, %v1224_v32, %v1232_v41  ;;  %v1241_v3 = vsel %vm770_vm12, %v1232_v41, %v1224_v32  ;;  %v1253_v32 = vld [vmem:[%s2983_s13 + $0x10] sm:$0xff]  ;;  %v1938_v41 = vpack.c.bf16 %v1519_v39, %v1517_v38  ;;  %v1526_v15 = vld [vmem:[%s3036_s7 + $0xa8] sm:$0xff] }
 0x633   :  { %v1247_v31 = vmul.f32 %v1237_v17, %v2545_v42  ;;  %v1248_v37 = vmul.f32 %v1241_v3, %v2551_v9  ;;  %v1528_v17 = vld [vmem:[%s3036_s7 + $0xb8] sm:$0xff] }
 0x634   :  { %1891 = vmatpush1.bf16.msra.mxu0 %v1890_v4 }
 0x635   :  { %v1234_v19 = vpop.permute.xlu1 %1233  ;;  %1893 = vmatprep.subr.bf16.mxu0 %v1892_v52  ;;  %v1523_v52 = vld [vmem:[%s3036_s7 + $0x90] sm:$0xff] }
 0x636   :  { %v1238_v26 = vsel %vm770_vm12, %v1226_v58, %v1234_v19  ;;  %v1242_v8 = vsel %vm770_vm12, %v1234_v19, %v1226_v58  ;;  %v1940_v58 = vpack.c.bf16 %v1524_v40, %v1522_v11  ;;  %v1942_v3 = vpack.c.bf16 %v1523_v52, %v1521_v2 }
 0x637   :  { %v1249_v4 = vmul.f32 %v1238_v26, %v2563_v20  ;;  %v1250_v44 = vmul.f32 %v1242_v8, %v2568_v23  ;;  %v1944_v19 = vpack.c.bf16 %v1528_v17, %v1526_v15  ;;  %v1527_v26 = vld [vmem:[%s3036_s7 + $0xb0] sm:$0xff]  ;;  %v1530_v8 = vld [vmem:[%s3036_s7 + $0xc8] sm:$0xff]  ;;  %v1962_v17 = vld [vmem:[%s3029_s24] sm:$0xff] }
 0x638   :  { %1895 = vmatpush1.bf16.msra.mxu0 %v1894_v29  ;;  %v1525_v29 = vld [vmem:[%s3036_s7 + $0xa0] sm:$0xff]  ;;  %v1948_v43 = vpack.c.bf16 %v1532_v28, %v1530_v8 }
 0x639   :  { %v1898_v13 = vpack.c.bf16 %v1249_v4, %v1247_v31  ;;  %v1896_v18 = vpack.c.bf16 %v1250_v44, %v1248_v37  ;;  %v1529_v31 = vld [vmem:[%s3036_s7 + $0xc0] sm:$0xff]  ;;  %v1531_v37 = vld [vmem:[%s3036_s7 + $0xd0] sm:$0xff]  ;;  %v1534_v4 = vld [vmem:[%s3036_s7 + $0xe8] sm:$0xff] }
 0x63a   :  { %v1536_v44 = vld [vmem:[%s3036_s7 + $0xf8] sm:$0xff] }
 0x63b   :  { %1897 = vmatprep.subr.bf16.mxu0 %v1896_v18  ;;  %v1952_v18 = vpack.c.bf16 %v1536_v44, %v1534_v4 }
 0x63c   :  { %1899 = vmatpush1.bf16.msra.mxu0 %v1898_v13  ;;  %v1950_v13 = vpack.c.bf16 %v1531_v37, %v1529_v31 }
 0x63d   :  { %1925 = vmatprep.subr.bf16.mxu0 %v1924_v21  ;;  %v1533_v21 = vld [vmem:[%s3036_s7 + $0xe0] sm:$0xff] }
 0x63e   :  { %v1954_v22 = vpack.c.bf16 %v1535_v55, %v1533_v21 }
 0x63f   :  { %1712 = vmatmul.mubr.msk.f32.vlgmr.msra.gmra.mrb[14].mxu0 %vm1077_vm14, %v1251_v47 }
 0x640   :  { %1927 = vmatpush1.bf16.msra.mxu0 %v1926_v48  ;;  %1337 = vmatprep.mubr.f32.mxu0 %v1968_v14 }
 0x641   :  { %1929 = vmatprep.subr.bf16.mxu0 %v1928_v49 }
 0x643   :  { %1713 = vmatmul.mubr.msk.f32.gmra.mrb[16].mxu0 %vm1077_vm14, %v1252_v61 }
 0x644   :  { %1931 = vmatpush1.bf16.msra.mxu0 %v1930_v10  ;;  %1343 = vmatprep.mubr.f32.mxu0 %v1968_v14 }
 0x645   :  { %1933 = vmatprep.subr.bf16.mxu0 %v1932_v12 }
 0x647   :  { %1714 = vmatmul.mubr.msk.f32.gmra.mrb[18].mxu0 %vm1077_vm14, %v1253_v32 }
 0x648   :  { %1935 = vmatpush1.bf16.msra.mxu0 %v1934_v33  ;;  %1349 = vmatprep.mubr.f32.mxu0 %v1968_v14 }
 0x649   :  { %1937 = vmatprep.subr.bf16.mxu0 %v1936_v36 }
 0x64b   :  { %1715 = vmatmul.mubr.msk.f32.gmra.mrb[20].mxu0 %vm1077_vm14, %v1254_v30 }
 0x64c   :  { %1939 = vmatpush1.bf16.msra.mxu0 %v1938_v41  ;;  %1601 = vmatprep.mubr.f32.mxu0 %v1968_v14  ;;  %v1946_v14 = vpack.c.bf16 %v1527_v26, %v1525_v29 }
 0x64d   :  { %1941 = vmatprep.subr.bf16.mxu0 %v1940_v58 }
 0x650   :  { %1943 = vmatpush1.bf16.msra.mxu0 %v1942_v3 }
 0x651   :  { %1945 = vmatprep.subr.bf16.mxu0 %v1944_v19  ;;  %v1963_v19 = vld [vmem:[%s3029_s24 + $0x8] sm:$0xff] }
 0x654   :  { %1947 = vmatpush1.bf16.msra.mxu0 %v1946_v14 }
 0x655   :  { %1949 = vmatprep.subr.bf16.mxu0 %v1948_v43 }
 0x658   :  { %1951 = vmatpush1.bf16.msra.mxu0 %v1950_v13 }
 0x659   :  { %1953 = vmatprep.subr.bf16.mxu0 %v1952_v18 }
 0x65c   :  { %1955 = vmatpush1.bf16.msra.mxu0 %v1954_v22 }
 0x65f   :  { %1602 = vmatmul.mubr.f32.vlgmr.msra.gmra.mrb[22].mxu0 %v736_v56 }
 0x712   :  { %v1333_v45 = vpop.f32.mrb[14].mxu0 }
 0x713   :  { %v2829_v46 = vmax.f32 %v1333_v45, 0.0  ;;  %v1335_v47 = vpop.f32.mrb[15].mxu0 }
 0x714   :  { %v2833_v49 = vmax.f32 %v1335_v47, 0.0 }
 0x715   :  { %1364 = vrot.lane.b32.xlu0 %v2829_v46, %s1966_s15 }
 0x716   :  { %v1339_v48 = vpop.f32.mrb[16].mxu0 }
 0x717   :  { %v2835_v62 = vmax.f32 %v1339_v48, 0.0  ;;  %v1341_v0 = vpop.f32.mrb[17].mxu0 }
 0x718   :  { %v2837_v50 = vmax.f32 %v1341_v0, 0.0 }
 0x719   :  { %v1910_v57 = vpack.c.bf16 %v2835_v62, %v2829_v46  ;;  %1372 = vrot.lane.b32.xlu0 %v2833_v49, %s1966_s15  ;;  %1366 = vrot.lane.b32.xlu1 %v2835_v62, %s1966_s15 }
 0x71a   :  { %v1345_v53 = vpop.f32.mrb[18].mxu0  ;;  %v1908_v56 = vpack.c.bf16 %v2837_v50, %v2833_v49 }
 0x71b   :  { %v2847_v61 = vmax.f32 %v1345_v53, 0.0  ;;  %v1347_v10 = vpop.f32.mrb[19].mxu0 }
 0x71c   :  { %v2853_v16 = vmax.f32 %v1347_v10, 0.0 }
 0x71d   :  { %1374 = vrot.lane.b32.xlu1 %v2837_v50, %s1966_s15  ;;  %1368 = vrot.lane.b32.xlu0 %v2847_v61, %s1966_s15 }
 0x71e   :  { %v1351_v12 = vpop.f32.mrb[20].mxu0 }
 0x71f   :  { %v2855_v24 = vmax.f32 %v1351_v12, 0.0  ;;  %v1353_v25 = vpop.f32.mrb[21].mxu0 }
 0x720   :  { %v2857_v27 = vmax.f32 %v1353_v25, 0.0 }
 0x721   :  { %v1914_v32 = vpack.c.bf16 %v2855_v24, %v2847_v61  ;;  %1376 = vrot.lane.b32.xlu0 %v2853_v16, %s1966_s15  ;;  %1370 = vrot.lane.b32.xlu1 %v2855_v24, %s1966_s15 }
 0x722   :  { %v1912_v33 = vpack.c.bf16 %v2857_v27, %v2853_v16 }
 0x725   :  { %1396 = vrot.lane.b32.xlu0 %v2829_v46, %s1967_s17  ;;  %1378 = vrot.lane.b32.xlu1 %v2857_v27, %s1966_s15 }
 0x729   :  { %1404 = vrot.lane.b32.xlu0 %v2833_v49, %s1967_s17  ;;  %1398 = vrot.lane.b32.xlu1 %v2835_v62, %s1967_s17 }
 0x72d   :  { %1400 = vrot.lane.b32.xlu0 %v2847_v61, %s1967_s17  ;;  %1406 = vrot.lane.b32.xlu1 %v2837_v50, %s1967_s17 }
 0x731   :  { %1408 = vrot.lane.b32.xlu0 %v2853_v16, %s1967_s17  ;;  %1402 = vrot.lane.b32.xlu1 %v2855_v24, %s1967_s17 }
 0x732   :  { %v2883_v36 = vpop.f32.mrb[22].mxu0 }
 0x733   :  { %v2885_v38 = vpop.f32.mrb[23].mxu0 }
 0x735   :  { %1410 = vrot.lane.b32.xlu1 %v2857_v27, %s1967_s17 }
 0x787   :  { %v1365_v39 = vpop.permute.xlu0 %1364 }
 0x78b   :  { %v1373_v11 = vpop.permute.xlu0 %1372  ;;  %v1367_v40 = vpop.permute.xlu1 %1366 }
 0x78c   :  { %v1380_v30 = vsel %vm761_vm10, %v1365_v39, %v1373_v11  ;;  %v1384_v41 = vsel %vm761_vm10, %v1373_v11, %v1365_v39 }
 0x78d   :  { %v1388_v3 = vmul.f32 %v1962_v17, %v1384_v41  ;;  %v1389_v29 = vmul.f32 %v1963_v19, %v1380_v30 }
 0x78f   :  { %v1375_v58 = vpop.permute.xlu1 %1374  ;;  %v1369_v2 = vpop.permute.xlu0 %1368 }
 0x790   :  { %v1381_v52 = vsel %vm761_vm10, %v1367_v40, %v1375_v58  ;;  %v1385_v15 = vsel %vm761_vm10, %v1375_v58, %v1367_v40 }
 0x791   :  { %v1390_v26 = vmul.f32 %v1385_v15, %v2327_v63  ;;  %v1391_v8 = vmul.f32 %v1381_v52, %v2332_v1 }
 0x793   :  { %v1902_v28 = vpack.c.bf16 %v1390_v26, %v1388_v3  ;;  %v1377_v14 = vpop.permute.xlu0 %1376  ;;  %v1371_v43 = vpop.permute.xlu1 %1370  ;;  %v1900_v31 = vpack.c.bf16 %v1391_v8, %v1389_v29 }
 0x794   :  { %v1382_v37 = vsel %vm761_vm10, %v1369_v2, %v1377_v14  ;;  %v1386_v4 = vsel %vm761_vm10, %v1377_v14, %v1369_v2  ;;  %v1629_v2 = vunpack.c.l.s4 %v1971_v7 }
 0x795   :  { %1901 = vmatprep.subr.bf16.mxu1 %v1900_v31  ;;  %v1392_v1 = vmul.f32 %v1386_v4, %v2491_v51  ;;  %v1393_v21 = vmul.f32 %v1382_v37, %v2496_v54 }
 0x796   :  { %1903 = vmatpush1.bf16.msra.mxu1 %v1902_v28 }
 0x797   :  { %v1397_v44 = vpop.permute.xlu0 %1396  ;;  %v1379_v13 = vpop.permute.xlu1 %1378 }
 0x798   :  { %v1383_v18 = vsel %vm761_vm10, %v1371_v43, %v1379_v13  ;;  %v1387_v63 = vsel %vm761_vm10, %v1379_v13, %v1371_v43 }
 0x799   :  { %v1394_v55 = vmul.f32 %v1387_v63, %v2505_v59  ;;  %v1395_v22 = vmul.f32 %v1383_v18, %v2510_v60 }
 0x79b   :  { %v1906_v45 = vpack.c.bf16 %v1394_v55, %v1392_v1  ;;  %v1405_v47 = vpop.permute.xlu0 %1404  ;;  %v1399_v48 = vpop.permute.xlu1 %1398  ;;  %v1904_v49 = vpack.c.bf16 %v1395_v22, %v1393_v21 }
 0x79c   :  { %v1416_v53 = vsel %vm770_vm12, %v1405_v47, %v1397_v44  ;;  %v1412_v60 = vsel %vm770_vm12, %v1397_v44, %v1405_v47 }
 0x79d   :  { %1905 = vmatprep.subr.bf16.mxu1 %v1904_v49 }
 0x79e   :  { %1907 = vmatpush1.bf16.msra.mxu1 %v1906_v45 }
 0x79f   :  { %v1401_v0 = vpop.permute.xlu0 %1400  ;;  %1909 = vmatprep.subr.bf16.mxu1 %v1908_v56  ;;  %v1407_v50 = vpop.permute.xlu1 %1406  ;;  %v1964_v56 = vld [vmem:[%s3031_s30 + $0x8] sm:$0xff] }
 0x7a0   :  { %v1417_v51 = vsel %vm770_vm12, %v1407_v50, %v1399_v48  ;;  %v1413_v54 = vsel %vm770_vm12, %v1399_v48, %v1407_v50  ;;  %v1421_v10 = vmul.f32 %v1964_v56, %v1416_v53 }
 0x7a1   :  { %v1423_v59 = vmul.f32 %v1417_v51, %v2358_v35  ;;  %v1422_v25 = vmul.f32 %v1413_v54, %v2353_v34  ;;  %v1965_v35 = vld [vmem:[%s3031_s30] sm:$0xff] }
 0x7a2   :  { %1911 = vmatpush1.bf16.msra.mxu1 %v1910_v57  ;;  %v1420_v46 = vmul.f32 %v1965_v35, %v1412_v60 }
 0x7a3   :  { %v1409_v12 = vpop.permute.xlu0 %1408  ;;  %v1403_v16 = vpop.permute.xlu1 %1402  ;;  %1913 = vmatprep.subr.bf16.mxu1 %v1912_v33  ;;  %v1916_v27 = vpack.c.bf16 %v1423_v59, %v1421_v10 }
 0x7a4   :  { %v1414_v62 = vsel %vm770_vm12, %v1401_v0, %v1409_v12  ;;  %v1418_v57 = vsel %vm770_vm12, %v1409_v12, %v1401_v0  ;;  %v1918_v33 = vpack.c.bf16 %v1422_v25, %v1420_v46 }
 0x7a5   :  { %v1424_v40 = vmul.f32 %v1414_v62, %v2545_v42  ;;  %v1425_v30 = vmul.f32 %v1418_v57, %v2551_v9  ;;  %v1614_v42 = vsub.s32 0, %v2128_v6  ;;  %v1610_v9 = vld [vmem:[%s3037_s23] sm:$0x3] }
 0x7a6   :  { %1915 = vmatpush1.bf16.msra.mxu1 %v1914_v32  ;;  %v1428_v32 = vld [vmem:[%s2984_s14] sm:$0x1] }
 0x7a7   :  { %v1411_v39 = vpop.permute.xlu1 %1410  ;;  %1917 = vmatprep.subr.bf16.mxu1 %v1916_v27  ;;  %v1615_v17 = vrot.slane %v1610_v9, %v1614_v42 }
 0x7a8   :  { %v1415_v34 = vsel %vm770_vm12, %v1403_v16, %v1411_v39  ;;  %v1419_v11 = vsel %vm770_vm12, %v1411_v39, %v1403_v16 }
 0x7a9   :  { %v1426_v41 = vmul.f32 %v1415_v34, %v2563_v20  ;;  %v1427_v58 = vmul.f32 %v1419_v11, %v2568_v23  ;;  %v1618_v20 = vsub.s32 1, %v2128_v6  ;;  %v1630_v23 = vunpack.c.0.s8 %v1629_v2 }
 0x7aa   :  { %1919 = vmatpush1.bf16.msra.mxu1 %v1918_v33 }
 0x7ab   :  { %v1922_v61 = vpack.c.bf16 %v1426_v41, %v1424_v40  ;;  %v1920_v24 = vpack.c.bf16 %v1427_v58, %v1425_v30  ;;  %v1619_v29 = vrot.slane %v1610_v9, %v1618_v20  ;;  %v1633_v26 = vsub.s32 %v1630_v23, %v2128_v6 }
 0x7ad   :  { %1921 = vmatprep.subr.bf16.mxu1 %v1920_v24 }
 0x7ae   :  { %1923 = vmatpush1.bf16.msra.mxu1 %v1922_v61 }
 0x7b1   :  { %1716 = vmatmul.mubr.msk.f32.vlgmr.msra.gmra.mrb[14].mxu1 %vm1077_vm14, %v1428_v32 }
 0x884   :  { %v1498_v52 = vpop.f32.mrb[14].mxu1 }
 0x885   :  { %v1503_v15 = vmax.f32 %v1498_v52, 0.0  ;;  %v1500_v3 = vpop.f32.mrb[15].mxu1 }
 0x886   :  { %v1504_v19 = vmax.f32 %v1500_v3, 0.0 }
 0x887   :  { %v1608_v8 = vmul.f32 %v2883_v36, %v1503_v15 }
 0x888   :  { %v1609_v28 = vmul.f32 %v2885_v38, %v1504_v19  ;;  %v1627_v14 = vcombine.low %v1503_v15, %v1504_v19 }
 0x889   :  { %v1622_v43 = vmul.f32 %v1615_v17, %v1608_v8 }
 0x88a   :  { %v1623_v31 = vmul.f32 %v1619_v29, %v1609_v28  ;;  %v1634_v37 = vrot.slane %v1627_v14, %v1633_v26 }
 0x88c   :  { %v1641_v4 = vrot.slane %v1634_v37, %v1633_v26  ;;  %v1650_v44 = vcombine.low %v1622_v43, %v1623_v31 }
 0x88e   :  { %1647 = vst.msk [vmem:[%s2996_s26] sm:$0x3] %vm1645_vm15, %v1641_v4  ;;  %v1657_v13 = vrot.slane %v1650_v44, %v1633_v26 }
 0x890   :  { %v1664_v18 = vrot.slane %v1657_v13, %v1633_v26 }
 0x892   :  { %1666 = vst.msk [vmem:[%s2997_s27] sm:$0x3] %vm1645_vm15, %v1664_v18 }

</bundles_post_ra>
